<compile_context>
chip_gen: v6e
topology: v6e:2x2x1
jax: 0.10.0
libtpu: 0.0.40
codegen_flags: <defaults>
</compile_context>

<pallas_src>
import functools

import jax
import jax.numpy as jnp
from jax.experimental import pallas as pl
from jax.experimental.pallas import tpu as pltpu

_LN_EPS = 1e-5                       # torch.nn.LayerNorm default eps
_GELU_K = 0.7978845608028654         # sqrt(2 / pi)


def _gelu(x):
    # tanh-approx GELU (tanh lowers to the EUP slot, off the saturated VALU).
    # torch's nn.GELU() default is exact erf; the tanh form deviates <~1e-3.
    # Dropout(p=0) inside MlpUBlock is the identity and is omitted.
    return 0.5 * x * (1.0 + jnp.tanh(_GELU_K * (x + 0.044715 * x * x * x)))


# --------------------------------- kernel ---------------------------------- #
def _umix_kernel(x_ref, w_ref, v_ref, cb1_ref, cb2_ref, out_ref,
                 *, bt, c, f, h):
    """Full UMixBlock on one (bt*c, f) activation block.

    w_ref  : (14, RMAX, CMAX) bf16  - 12 feature-MLP weights (stored (in,out))
                                      + 2 block-diagonal channel-MLP weights.
    v_ref  : (26, VMAX)       f32   - 12 feature-MLP biases + 14 LayerNorm
                                      gamma/beta rows (zero-padded to VMAX).
    cb1_ref/cb2_ref : (bt*2c,1)/(bt*c,1) f32 channel-MLP bias columns.
    """
    m = bt * c

    # -- parameter access helpers: loads happen at point of use --------------
    def w(i, rows, cols):
        return w_ref[i, :rows, :cols]                      # bf16 (rows, cols)

    def v(i, d):
        return v_ref[i:i + 1, :d]                          # f32 (1, d)

    def mlp(xx, wi, bi, din, dh, dout):
        # x @ W1 + b1 -> GELU -> @ W2 + b2   (bf16 MXU inputs, f32 accumulate)
        hh = jnp.dot(xx.astype(jnp.bfloat16), w(wi, din, dh),
                     preferred_element_type=jnp.float32) + v(bi, dh)
        hh = _gelu(hh)
        return jnp.dot(hh.astype(jnp.bfloat16), w(wi + 1, dh, dout),
                       preferred_element_type=jnp.float32) + v(bi + 1, dout)

    def layernorm(xx, gi, d):
        mu = jnp.mean(xx, axis=-1, keepdims=True)
        xc = xx - mu
        var = jnp.mean(xc * xc, axis=-1, keepdims=True)
        return xc * jax.lax.rsqrt(var + _LN_EPS) * v(gi, d) + v(gi + 1, d)

    # Shared channel MLP (used 6x) -> hoist its weights/biases once.
    # level_channel(x.transpose(1,2)).transpose(1,2) is done transpose-free and
    # batch-folded:  out = W2_bd @ gelu(W1_bd @ X + b1) + b2, with
    # W*_bd = kron(I_bt, W*) block-diagonal so all bt*c rows go in one matmul.
    cw1 = w(12, bt * 2 * c, m)                             # (bt*2c, m)  bf16
    cw2 = w(13, m, bt * 2 * c)                             # (m, bt*2c)  bf16
    cb1 = cb1_ref[...]                                     # (bt*2c, 1)  f32
    cb2 = cb2_ref[...]                                     # (m, 1)      f32

    def channel_mix(xx):
        hh = jnp.dot(cw1, xx.astype(jnp.bfloat16),
                     preferred_element_type=jnp.float32) + cb1
        hh = _gelu(hh)
        return jnp.dot(cw2, hh.astype(jnp.bfloat16),
                       preferred_element_type=jnp.float32) + cb2

    # -- forward: identical op order to UMixBlock.forward --------------------
    x = x_ref[...]                                         # (m, f) f32

    xn = layernorm(x, 12, f)                               # norm1
    x2 = mlp(xn, 0, 0, f, h, f // 2)                       # level_down1
    x2 = channel_mix(x2)
    x2 = layernorm(x2, 14, f // 2)                         # norm1_down
    x3 = mlp(x2, 2, 2, f // 2, h // 2, f // 4)             # level_down2
    x3 = channel_mix(x3)
    x3 = layernorm(x3, 16, f // 4)                         # norm2_down
    x4 = mlp(x3, 4, 4, f // 4, h // 4, f // 8)             # level_down3
    x4 = channel_mix(x4)
    x4 = layernorm(x4, 18, f // 8)                         # norm3_down
    x5 = mlp(x4, 6, 6, f // 8, h // 4, f // 4)             # level_up1
    x5 = layernorm(x5, 20, f // 4)                         # norm1_up
    x5 = channel_mix(x5)
    x5 = x5 + x3
    x6 = mlp(x5, 8, 8, f // 4, h // 2, f // 2)             # level_up2
    x6 = layernorm(x6, 22, f // 2)                         # norm2_up
    x6 = channel_mix(x6)
    x6 = x6 + x2
    x7 = mlp(x6, 10, 10, f // 2, h, f)                     # level_up3
    x7 = layernorm(x7, 24, f)                              # norm3_up
    x7 = channel_mix(x7)
    x7 = x7 + xn          # torch adds the *normed* x (x was reassigned by norm1)

    out_ref[...] = x7.astype(out_ref.dtype)


# ---------------------------- parameter packing ----------------------------- #
def _pack_params(params, b_tile):
    """Pack the 40 per-layer tensors into 4 kernel inputs."""
    mats, vecs = [], []
    for (w1, b1, w2, b2) in params["mlps"]:
        mats += [w1, w2]
        vecs += [b1, b2]
    kw1, kb1, kw2, kb2 = params["chan"]
    eye = jnp.eye(b_tile, dtype=kw1.dtype)
    mats += [jnp.kron(eye, kw1), jnp.kron(eye, kw2)]       # batch-folded (block-diag)
    for (g, be) in params["ln"]:
        vecs += [g, be]

    rmax = max(int(a.shape[0]) for a in mats)
    cmax = max(int(a.shape[1]) for a in mats)
    vmax = max(int(a.shape[0]) for a in vecs)
    wpack = jnp.stack([jnp.pad(a, ((0, rmax - a.shape[0]),
                                   (0, cmax - a.shape[1]))) for a in mats])
    wpack = wpack.astype(jnp.bfloat16)
    vpack = jnp.stack([jnp.pad(a, (0, vmax - a.shape[0])) for a in vecs])
    vpack = vpack.astype(jnp.float32)

    c = int(kb2.shape[0])
    cb1col = jnp.tile(kb1, (b_tile,)).reshape(b_tile * 2 * c, 1).astype(jnp.float32)
    cb2col = jnp.tile(kb2, (b_tile,)).reshape(b_tile * c, 1).astype(jnp.float32)
    return wpack, vpack, cb1col, cb2col


def _cost_estimate(B, C, F, H, param_bytes):
    stages = [(F, H, F // 2), (F // 2, H // 2, F // 4), (F // 4, H // 4, F // 8),
              (F // 8, H // 4, F // 4), (F // 4, H // 2, F // 2), (F // 2, H, F)]
    flops, trans = 0, 0
    for din, dh, dout in stages:
        flops += 2 * B * C * dh * (din + dout)             # two matmuls per MLP
        trans += B * C * dh                                # one tanh per hidden elt
    for d in (F // 2, F // 4, F // 8, F // 4, F // 2, F):  # 6 channel-mix uses
        flops += 8 * B * C * C * d
        trans += 2 * B * C * d
    trans += 7 * B * C                                     # one rsqrt per LN row
    bytes_accessed = 2 * B * C * F * 4 + param_bytes
    return pl.CostEstimate(flops=flops, transcendentals=trans,
                           bytes_accessed=bytes_accessed)


def _default_b_tile(B):
    # Fold as much of the batch as possible into the matmul M dimension, but
    # keep 2 grid blocks when the batch allows so the "parallel" grid axis can
    # be sharded across v7x's two TensorCores.  At B=2 this is one block.
    if B >= 4 and B % 2 == 0:
        return B // 2
    return B


# --------------------------------- wrapper ---------------------------------- #
@functools.partial(jax.jit, static_argnames=("b_tile",))
def umix_forward(x, params, b_tile=None):
    B, C, F = x.shape
    H = int(params["mlps"][0][0].shape[1])
    if b_tile is None:
        b_tile = _default_b_tile(B)
    if (b_tile * C) % 8 != 0:       # keep the block 8-row aligned (or full array)
        b_tile = B
    assert B % b_tile == 0

    wpack, vpack, cb1col, cb2col = _pack_params(params, b_tile)
    param_bytes = wpack.size * 2 + (vpack.size + cb1col.size + cb2col.size) * 4

    x2d = x.reshape(B * C, F)       # batch folded into the matmul M dimension
    kernel = functools.partial(_umix_kernel, bt=b_tile, c=C, f=F, h=H)

    out2d = pl.pallas_call(
        kernel,
        out_shape=jax.ShapeDtypeStruct((B * C, F), jnp.float32),
        grid_spec=pltpu.PrefetchScalarGridSpec(
            num_scalar_prefetch=0,
            grid=(B // b_tile,),
            in_specs=[
                pl.BlockSpec((b_tile * C, F), lambda i: (i, 0)),
                pl.BlockSpec(wpack.shape, lambda i: (0, 0, 0)),   # VMEM-resident
                pl.BlockSpec(vpack.shape, lambda i: (0, 0)),
                pl.BlockSpec(cb1col.shape, lambda i: (0, 0)),
                pl.BlockSpec(cb2col.shape, lambda i: (0, 0)),
            ],
            out_specs=pl.BlockSpec((b_tile * C, F), lambda i: (i, 0)),
        ),
        compiler_params=pltpu.CompilerParams(
            dimension_semantics=("parallel",)),
        cost_estimate=_cost_estimate(B, C, F, H, param_bytes),
    )(x2d, wpack, vpack, cb1col, cb2col)
    return out2d.reshape(B, C, F)


# ----------------------------- parameter setup ------------------------------ #
def init_umix_params(key, in_f, hid_f_h, channel):
    """Deterministic synthetic parameters (same structure as the torch module).

    Feature-MLP weights are stored (in, out) so the kernel computes x @ W + b.
    The shared channel MLP is stored in torch (out, in) layout and applied from
    the left along the channel dimension.
    """
    assert in_f % 8 == 0 and hid_f_h % 4 == 0
    f, h, c = in_f, hid_f_h, channel
    keys = iter(jax.random.split(key, 32))

    def linear(fan_in, fan_out):
        wt = (jax.random.normal(next(keys), (fan_in, fan_out), jnp.float32)
              / jnp.sqrt(jnp.float32(fan_in)))
        b = 0.01 * jax.random.normal(next(keys), (fan_out,), jnp.float32)
        return wt, b

    mlps = []
    for din, dh, dout in [(f, h, f // 2), (f // 2, h // 2, f // 4),
                          (f // 4, h // 4, f // 8), (f // 8, h // 4, f // 4),
                          (f // 4, h // 2, f // 2), (f // 2, h, f)]:
        w1, b1 = linear(din, dh)
        w2, b2 = linear(dh, dout)
        mlps.append((w1, b1, w2, b2))

    # torch.nn.LayerNorm default init: weight = 1, bias = 0
    lns = [(jnp.ones((d,), jnp.float32), jnp.zeros((d,), jnp.float32))
           for d in (f, f // 2, f // 4, f // 8, f // 4, f // 2, f)]

    # shared channel MLP: Linear(c, 2c) -> GELU -> Linear(2c, c)  (torch layout)
    kw1 = (jax.random.normal(next(keys), (2 * c, c), jnp.float32)
           / jnp.sqrt(jnp.float32(c)))
    kb1 = 0.01 * jax.random.normal(next(keys), (2 * c,), jnp.float32)
    kw2 = (jax.random.normal(next(keys), (c, 2 * c), jnp.float32)
           / jnp.sqrt(jnp.float32(2 * c)))
    kb2 = 0.01 * jax.random.normal(next(keys), (c,), jnp.float32)

    return {"mlps": mlps, "ln": lns, "chan": (kw1, kb1, kw2, kb2)}


# -------------------------------- reference --------------------------------- #
def _reference_forward(x, params):
    """Pure-JAX mirror of UMixBlock.forward with the same bf16-matmul /
    tanh-GELU numerics as the kernel (no Pallas)."""
    def bdot(a, b):
        return jnp.dot(a.astype(jnp.bfloat16), b.astype(jnp.bfloat16),
                       preferred_element_type=jnp.float32)

    def mlp(xx, w1, b1, w2, b2):
        return bdot(_gelu(bdot(xx, w1) + b1), w2) + b2

    def ln(xx, g, b):
        mu = jnp.mean(xx, axis=-1, keepdims=True)
        d = xx - mu
        var = jnp.mean(d * d, axis=-1, keepdims=True)
        return d * jax.lax.rsqrt(var + _LN_EPS) * g + b

    kw1, kb1, kw2, kb2 = params["chan"]

    def cmix(xx):                       # level_channel(x.transpose(1,2)).transpose(1,2)
        xt = jnp.swapaxes(xx, 1, 2)
        hh = _gelu(bdot(xt, kw1.T) + kb1)
        return jnp.swapaxes(bdot(hh, kw2.T) + kb2, 1, 2)

    m, lns = params["mlps"], params["ln"]
    xn = ln(x, *lns[0])
    x2 = ln(cmix(mlp(xn, *m[0])), *lns[1])
    x3 = ln(cmix(mlp(x2, *m[1])), *lns[2])
    x4 = ln(cmix(mlp(x3, *m[2])), *lns[3])
    x5 = cmix(ln(mlp(x4, *m[3]), *lns[4])) + x3
    x6 = cmix(ln(mlp(x5, *m[4]), *lns[5])) + x2
    x7 = cmix(ln(mlp(x6, *m[5]), *lns[6])) + xn
    return x7


# ----------------------------------- main ------------------------------------ #
if __name__ == "__main__":
    B, C, in_f, hid_f_h = 2, 8, 32, 64          # x: (batch, channel, in_f)
    key = jax.random.PRNGKey(0)
    kx, kp = jax.random.split(key)
    x = jax.random.normal(kx, (B, C, in_f), jnp.float32)
    params = init_umix_params(kp, in_f, hid_f_h, C)

    out = umix_forward(x, params)
    jax.block_until_ready(out)
    assert out.shape == (B, C, in_f) and out.dtype == jnp.float32

    ref = jax.jit(_reference_forward)(x, params)
    max_err = float(jnp.max(jnp.abs(out - ref)))
    assert max_err < 5e-3, f"mismatch vs reference: {max_err}"

    print("KERNEL_OK")
</pallas_src>

<mosaic_0001>
module attributes {stable_mosaic.version = 11 : i64} {
  func.func @_umix_kernel(%arg0: i32, %arg1: memref<16x32xf32, #tpu.memory_space<vmem>>, %arg2: memref<14x64x64xbf16, #tpu.memory_space<vmem>>, %arg3: memref<26x64xf32, #tpu.memory_space<vmem>>, %arg4: memref<32x1xf32, #tpu.memory_space<vmem>>, %arg5: memref<16x1xf32, #tpu.memory_space<vmem>>, %arg6: memref<16x32xf32, #tpu.memory_space<vmem>>) attributes {dimension_semantics = [#tpu.dimension_semantics<parallel>], iteration_bounds = array<i64: 1>, scalar_prefetch = 0 : i64, scratch_operands = 0 : i64, tpu.core_type = #tpu.core_type<tc>, window_params = [{transform_indices = @transform_0, window_bounds = array<i64: 16, 32>}, {pipeline_mode = #tpu.pipeline_mode<synchronous>, transform_indices = @transform_1, window_bounds = array<i64: 14, 64, 64>}, {pipeline_mode = #tpu.pipeline_mode<synchronous>, transform_indices = @transform_2, window_bounds = array<i64: 26, 64>}, {pipeline_mode = #tpu.pipeline_mode<synchronous>, transform_indices = @transform_3, window_bounds = array<i64: 32, 1>}, {pipeline_mode = #tpu.pipeline_mode<synchronous>, transform_indices = @transform_4, window_bounds = array<i64: 16, 1>}, {transform_indices = @transform_5, window_bounds = array<i64: 16, 32>}]} {
    %c12 = arith.constant 12 : index
    %c0 = arith.constant 0 : index
    %c0_0 = arith.constant 0 : index
    %0 = vector.load %arg2[%c12, %c0, %c0_0] : memref<14x64x64xbf16, #tpu.memory_space<vmem>>, vector<1x32x16xbf16>
    %1 = vector.shape_cast %0 : vector<1x32x16xbf16> to vector<32x16xbf16>
    %c13 = arith.constant 13 : index
    %c0_1 = arith.constant 0 : index
    %c0_2 = arith.constant 0 : index
    %2 = vector.load %arg2[%c13, %c0_1, %c0_2] : memref<14x64x64xbf16, #tpu.memory_space<vmem>>, vector<1x16x32xbf16>
    %3 = vector.shape_cast %2 : vector<1x16x32xbf16> to vector<16x32xbf16>
    %c0_3 = arith.constant 0 : index
    %c0_4 = arith.constant 0 : index
    %4 = vector.load %arg4[%c0_3, %c0_4] : memref<32x1xf32, #tpu.memory_space<vmem>>, vector<32x1xf32>
    %c0_5 = arith.constant 0 : index
    %c0_6 = arith.constant 0 : index
    %5 = vector.load %arg5[%c0_5, %c0_6] : memref<16x1xf32, #tpu.memory_space<vmem>>, vector<16x1xf32>
    %c0_7 = arith.constant 0 : index
    %c0_8 = arith.constant 0 : index
    %6 = vector.load %arg1[%c0_7, %c0_8] : memref<16x32xf32, #tpu.memory_space<vmem>>, vector<16x32xf32>
    %cst = arith.constant dense<0.000000e+00> : vector<16xf32>
    %7 = vector.multi_reduction <add>, %6, %cst [1] : vector<16x32xf32> to vector<16xf32>
    %8 = vector.shape_cast %7 : vector<16xf32> to vector<16x1xf32>
    %cst_9 = arith.constant 3.200000e+01 : f32
    %9 = vector.broadcast %cst_9 : f32 to vector<16x1xf32>
    %10 = arith.divf %8, %9 : vector<16x1xf32>
    %11 = vector.broadcast %10 : vector<16x1xf32> to vector<16x32xf32>
    %12 = arith.subf %6, %11 : vector<16x32xf32>
    %13 = arith.mulf %12, %12 : vector<16x32xf32>
    %cst_10 = arith.constant dense<0.000000e+00> : vector<16xf32>
    %14 = vector.multi_reduction <add>, %13, %cst_10 [1] : vector<16x32xf32> to vector<16xf32>
    %15 = vector.shape_cast %14 : vector<16xf32> to vector<16x1xf32>
    %cst_11 = arith.constant 3.200000e+01 : f32
    %16 = vector.broadcast %cst_11 : f32 to vector<16x1xf32>
    %17 = arith.divf %15, %16 : vector<16x1xf32>
    %cst_12 = arith.constant 9.99999974E-6 : f32
    %18 = vector.broadcast %cst_12 : f32 to vector<16x1xf32>
    %19 = arith.addf %17, %18 : vector<16x1xf32>
    %20 = math.rsqrt %19 : vector<16x1xf32>
    %21 = vector.broadcast %20 : vector<16x1xf32> to vector<16x32xf32>
    %22 = arith.mulf %12, %21 : vector<16x32xf32>
    %c12_13 = arith.constant 12 : index
    %c0_14 = arith.constant 0 : index
    %23 = vector.load %arg3[%c12_13, %c0_14] : memref<26x64xf32, #tpu.memory_space<vmem>>, vector<1x32xf32>
    %24 = vector.broadcast %23 : vector<1x32xf32> to vector<16x32xf32>
    %25 = arith.mulf %22, %24 : vector<16x32xf32>
    %c13_15 = arith.constant 13 : index
    %c0_16 = arith.constant 0 : index
    %26 = vector.load %arg3[%c13_15, %c0_16] : memref<26x64xf32, #tpu.memory_space<vmem>>, vector<1x32xf32>
    %27 = vector.broadcast %26 : vector<1x32xf32> to vector<16x32xf32>
    %28 = arith.addf %25, %27 : vector<16x32xf32>
    %29 = arith.truncf %28 : vector<16x32xf32> to vector<16x32xbf16>
    %c0_17 = arith.constant 0 : index
    %c0_18 = arith.constant 0 : index
    %c0_19 = arith.constant 0 : index
    %30 = vector.load %arg2[%c0_17, %c0_18, %c0_19] : memref<14x64x64xbf16, #tpu.memory_space<vmem>>, vector<1x32x64xbf16>
    %31 = vector.shape_cast %30 : vector<1x32x64xbf16> to vector<32x64xbf16>
    %cst_20 = arith.constant dense<0.000000e+00> : vector<16x64xf32>
    %32 = tpu.matmul %29, %31, %cst_20 {dimension_numbers = #tpu.dot_dimension_numbers<[1], [0], [0], [1], [0, 0, 1, 1], [], []>} : vector<16x32xbf16>, vector<32x64xbf16>, vector<16x64xf32> -> vector<16x64xf32>
    %c0_21 = arith.constant 0 : index
    %c0_22 = arith.constant 0 : index
    %33 = vector.load %arg3[%c0_21, %c0_22] : memref<26x64xf32, #tpu.memory_space<vmem>>, vector<1x64xf32>
    %34 = vector.broadcast %33 : vector<1x64xf32> to vector<16x64xf32>
    %35 = arith.addf %32, %34 : vector<16x64xf32>
    %cst_23 = arith.constant 5.000000e-01 : f32
    %36 = vector.broadcast %cst_23 : f32 to vector<16x64xf32>
    %37 = arith.mulf %36, %35 : vector<16x64xf32>
    %cst_24 = arith.constant 4.471500e-02 : f32
    %38 = vector.broadcast %cst_24 : f32 to vector<16x64xf32>
    %39 = arith.mulf %38, %35 : vector<16x64xf32>
    %40 = arith.mulf %39, %35 : vector<16x64xf32>
    %41 = arith.mulf %40, %35 : vector<16x64xf32>
    %42 = arith.addf %35, %41 : vector<16x64xf32>
    %cst_25 = arith.constant 0.797884583 : f32
    %43 = vector.broadcast %cst_25 : f32 to vector<16x64xf32>
    %44 = arith.mulf %43, %42 : vector<16x64xf32>
    %45 = math.tanh %44 : vector<16x64xf32>
    %cst_26 = arith.constant 1.000000e+00 : f32
    %46 = vector.broadcast %cst_26 : f32 to vector<16x64xf32>
    %47 = arith.addf %46, %45 : vector<16x64xf32>
    %48 = arith.mulf %37, %47 : vector<16x64xf32>
    %49 = arith.truncf %48 : vector<16x64xf32> to vector<16x64xbf16>
    %c1 = arith.constant 1 : index
    %c0_27 = arith.constant 0 : index
    %c0_28 = arith.constant 0 : index
    %50 = vector.load %arg2[%c1, %c0_27, %c0_28] : memref<14x64x64xbf16, #tpu.memory_space<vmem>>, vector<1x64x16xbf16>
    %51 = vector.shape_cast %50 : vector<1x64x16xbf16> to vector<64x16xbf16>
    %cst_29 = arith.constant dense<0.000000e+00> : vector<16x16xf32>
    %52 = tpu.matmul %49, %51, %cst_29 {dimension_numbers = #tpu.dot_dimension_numbers<[1], [0], [0], [1], [0, 0, 1, 1], [], []>} : vector<16x64xbf16>, vector<64x16xbf16>, vector<16x16xf32> -> vector<16x16xf32>
    %c1_30 = arith.constant 1 : index
    %c0_31 = arith.constant 0 : index
    %53 = vector.load %arg3[%c1_30, %c0_31] : memref<26x64xf32, #tpu.memory_space<vmem>>, vector<1x16xf32>
    %54 = vector.broadcast %53 : vector<1x16xf32> to vector<16x16xf32>
    %55 = arith.addf %52, %54 : vector<16x16xf32>
    %56 = arith.truncf %55 : vector<16x16xf32> to vector<16x16xbf16>
    %cst_32 = arith.constant dense<0.000000e+00> : vector<32x16xf32>
    %57 = tpu.matmul %1, %56, %cst_32 {dimension_numbers = #tpu.dot_dimension_numbers<[1], [0], [0], [1], [0, 0, 1, 1], [], []>} : vector<32x16xbf16>, vector<16x16xbf16>, vector<32x16xf32> -> vector<32x16xf32>
    %58 = vector.broadcast %4 : vector<32x1xf32> to vector<32x16xf32>
    %59 = arith.addf %57, %58 : vector<32x16xf32>
    %cst_33 = arith.constant 5.000000e-01 : f32
    %60 = vector.broadcast %cst_33 : f32 to vector<32x16xf32>
    %61 = arith.mulf %60, %59 : vector<32x16xf32>
    %cst_34 = arith.constant 4.471500e-02 : f32
    %62 = vector.broadcast %cst_34 : f32 to vector<32x16xf32>
    %63 = arith.mulf %62, %59 : vector<32x16xf32>
    %64 = arith.mulf %63, %59 : vector<32x16xf32>
    %65 = arith.mulf %64, %59 : vector<32x16xf32>
    %66 = arith.addf %59, %65 : vector<32x16xf32>
    %cst_35 = arith.constant 0.797884583 : f32
    %67 = vector.broadcast %cst_35 : f32 to vector<32x16xf32>
    %68 = arith.mulf %67, %66 : vector<32x16xf32>
    %69 = math.tanh %68 : vector<32x16xf32>
    %cst_36 = arith.constant 1.000000e+00 : f32
    %70 = vector.broadcast %cst_36 : f32 to vector<32x16xf32>
    %71 = arith.addf %70, %69 : vector<32x16xf32>
    %72 = arith.mulf %61, %71 : vector<32x16xf32>
    %73 = arith.truncf %72 : vector<32x16xf32> to vector<32x16xbf16>
    %cst_37 = arith.constant dense<0.000000e+00> : vector<16x16xf32>
    %74 = tpu.matmul %3, %73, %cst_37 {dimension_numbers = #tpu.dot_dimension_numbers<[1], [0], [0], [1], [0, 0, 1, 1], [], []>} : vector<16x32xbf16>, vector<32x16xbf16>, vector<16x16xf32> -> vector<16x16xf32>
    %75 = vector.broadcast %5 : vector<16x1xf32> to vector<16x16xf32>
    %76 = arith.addf %74, %75 : vector<16x16xf32>
    %cst_38 = arith.constant dense<0.000000e+00> : vector<16xf32>
    %77 = vector.multi_reduction <add>, %76, %cst_38 [1] : vector<16x16xf32> to vector<16xf32>
    %78 = vector.shape_cast %77 : vector<16xf32> to vector<16x1xf32>
    %cst_39 = arith.constant 1.600000e+01 : f32
    %79 = vector.broadcast %cst_39 : f32 to vector<16x1xf32>
    %80 = arith.divf %78, %79 : vector<16x1xf32>
    %81 = vector.broadcast %80 : vector<16x1xf32> to vector<16x16xf32>
    %82 = arith.subf %76, %81 : vector<16x16xf32>
    %83 = arith.mulf %82, %82 : vector<16x16xf32>
    %cst_40 = arith.constant dense<0.000000e+00> : vector<16xf32>
    %84 = vector.multi_reduction <add>, %83, %cst_40 [1] : vector<16x16xf32> to vector<16xf32>
    %85 = vector.shape_cast %84 : vector<16xf32> to vector<16x1xf32>
    %cst_41 = arith.constant 1.600000e+01 : f32
    %86 = vector.broadcast %cst_41 : f32 to vector<16x1xf32>
    %87 = arith.divf %85, %86 : vector<16x1xf32>
    %cst_42 = arith.constant 9.99999974E-6 : f32
    %88 = vector.broadcast %cst_42 : f32 to vector<16x1xf32>
    %89 = arith.addf %87, %88 : vector<16x1xf32>
    %90 = math.rsqrt %89 : vector<16x1xf32>
    %91 = vector.broadcast %90 : vector<16x1xf32> to vector<16x16xf32>
    %92 = arith.mulf %82, %91 : vector<16x16xf32>
    %c14 = arith.constant 14 : index
    %c0_43 = arith.constant 0 : index
    %93 = vector.load %arg3[%c14, %c0_43] : memref<26x64xf32, #tpu.memory_space<vmem>>, vector<1x16xf32>
    %94 = vector.broadcast %93 : vector<1x16xf32> to vector<16x16xf32>
    %95 = arith.mulf %92, %94 : vector<16x16xf32>
    %c15 = arith.constant 15 : index
    %c0_44 = arith.constant 0 : index
    %96 = vector.load %arg3[%c15, %c0_44] : memref<26x64xf32, #tpu.memory_space<vmem>>, vector<1x16xf32>
    %97 = vector.broadcast %96 : vector<1x16xf32> to vector<16x16xf32>
    %98 = arith.addf %95, %97 : vector<16x16xf32>
    %99 = arith.truncf %98 : vector<16x16xf32> to vector<16x16xbf16>
    %c2 = arith.constant 2 : index
    %c0_45 = arith.constant 0 : index
    %c0_46 = arith.constant 0 : index
    %100 = vector.load %arg2[%c2, %c0_45, %c0_46] : memref<14x64x64xbf16, #tpu.memory_space<vmem>>, vector<1x16x32xbf16>
    %101 = vector.shape_cast %100 : vector<1x16x32xbf16> to vector<16x32xbf16>
    %cst_47 = arith.constant dense<0.000000e+00> : vector<16x32xf32>
    %102 = tpu.matmul %99, %101, %cst_47 {dimension_numbers = #tpu.dot_dimension_numbers<[1], [0], [0], [1], [0, 0, 1, 1], [], []>} : vector<16x16xbf16>, vector<16x32xbf16>, vector<16x32xf32> -> vector<16x32xf32>
    %c2_48 = arith.constant 2 : index
    %c0_49 = arith.constant 0 : index
    %103 = vector.load %arg3[%c2_48, %c0_49] : memref<26x64xf32, #tpu.memory_space<vmem>>, vector<1x32xf32>
    %104 = vector.broadcast %103 : vector<1x32xf32> to vector<16x32xf32>
    %105 = arith.addf %102, %104 : vector<16x32xf32>
    %cst_50 = arith.constant 5.000000e-01 : f32
    %106 = vector.broadcast %cst_50 : f32 to vector<16x32xf32>
    %107 = arith.mulf %106, %105 : vector<16x32xf32>
    %cst_51 = arith.constant 4.471500e-02 : f32
    %108 = vector.broadcast %cst_51 : f32 to vector<16x32xf32>
    %109 = arith.mulf %108, %105 : vector<16x32xf32>
    %110 = arith.mulf %109, %105 : vector<16x32xf32>
    %111 = arith.mulf %110, %105 : vector<16x32xf32>
    %112 = arith.addf %105, %111 : vector<16x32xf32>
    %cst_52 = arith.constant 0.797884583 : f32
    %113 = vector.broadcast %cst_52 : f32 to vector<16x32xf32>
    %114 = arith.mulf %113, %112 : vector<16x32xf32>
    %115 = math.tanh %114 : vector<16x32xf32>
    %cst_53 = arith.constant 1.000000e+00 : f32
    %116 = vector.broadcast %cst_53 : f32 to vector<16x32xf32>
    %117 = arith.addf %116, %115 : vector<16x32xf32>
    %118 = arith.mulf %107, %117 : vector<16x32xf32>
    %119 = arith.truncf %118 : vector<16x32xf32> to vector<16x32xbf16>
    %c3 = arith.constant 3 : index
    %c0_54 = arith.constant 0 : index
    %c0_55 = arith.constant 0 : index
    %120 = vector.load %arg2[%c3, %c0_54, %c0_55] : memref<14x64x64xbf16, #tpu.memory_space<vmem>>, vector<1x32x8xbf16>
    %121 = vector.shape_cast %120 : vector<1x32x8xbf16> to vector<32x8xbf16>
    %cst_56 = arith.constant dense<0.000000e+00> : vector<16x8xf32>
    %122 = tpu.matmul %119, %121, %cst_56 {dimension_numbers = #tpu.dot_dimension_numbers<[1], [0], [0], [1], [0, 0, 1, 1], [], []>} : vector<16x32xbf16>, vector<32x8xbf16>, vector<16x8xf32> -> vector<16x8xf32>
    %c3_57 = arith.constant 3 : index
    %c0_58 = arith.constant 0 : index
    %123 = vector.load %arg3[%c3_57, %c0_58] : memref<26x64xf32, #tpu.memory_space<vmem>>, vector<1x8xf32>
    %124 = vector.broadcast %123 : vector<1x8xf32> to vector<16x8xf32>
    %125 = arith.addf %122, %124 : vector<16x8xf32>
    %126 = arith.truncf %125 : vector<16x8xf32> to vector<16x8xbf16>
    %cst_59 = arith.constant dense<0.000000e+00> : vector<32x8xf32>
    %127 = tpu.matmul %1, %126, %cst_59 {dimension_numbers = #tpu.dot_dimension_numbers<[1], [0], [0], [1], [0, 0, 1, 1], [], []>} : vector<32x16xbf16>, vector<16x8xbf16>, vector<32x8xf32> -> vector<32x8xf32>
    %128 = vector.broadcast %4 : vector<32x1xf32> to vector<32x8xf32>
    %129 = arith.addf %127, %128 : vector<32x8xf32>
    %cst_60 = arith.constant 5.000000e-01 : f32
    %130 = vector.broadcast %cst_60 : f32 to vector<32x8xf32>
    %131 = arith.mulf %130, %129 : vector<32x8xf32>
    %cst_61 = arith.constant 4.471500e-02 : f32
    %132 = vector.broadcast %cst_61 : f32 to vector<32x8xf32>
    %133 = arith.mulf %132, %129 : vector<32x8xf32>
    %134 = arith.mulf %133, %129 : vector<32x8xf32>
    %135 = arith.mulf %134, %129 : vector<32x8xf32>
    %136 = arith.addf %129, %135 : vector<32x8xf32>
    %cst_62 = arith.constant 0.797884583 : f32
    %137 = vector.broadcast %cst_62 : f32 to vector<32x8xf32>
    %138 = arith.mulf %137, %136 : vector<32x8xf32>
    %139 = math.tanh %138 : vector<32x8xf32>
    %cst_63 = arith.constant 1.000000e+00 : f32
    %140 = vector.broadcast %cst_63 : f32 to vector<32x8xf32>
    %141 = arith.addf %140, %139 : vector<32x8xf32>
    %142 = arith.mulf %131, %141 : vector<32x8xf32>
    %143 = arith.truncf %142 : vector<32x8xf32> to vector<32x8xbf16>
    %cst_64 = arith.constant dense<0.000000e+00> : vector<16x8xf32>
    %144 = tpu.matmul %3, %143, %cst_64 {dimension_numbers = #tpu.dot_dimension_numbers<[1], [0], [0], [1], [0, 0, 1, 1], [], []>} : vector<16x32xbf16>, vector<32x8xbf16>, vector<16x8xf32> -> vector<16x8xf32>
    %145 = vector.broadcast %5 : vector<16x1xf32> to vector<16x8xf32>
    %146 = arith.addf %144, %145 : vector<16x8xf32>
    %cst_65 = arith.constant dense<0.000000e+00> : vector<16xf32>
    %147 = vector.multi_reduction <add>, %146, %cst_65 [1] : vector<16x8xf32> to vector<16xf32>
    %148 = vector.shape_cast %147 : vector<16xf32> to vector<16x1xf32>
    %cst_66 = arith.constant 8.000000e+00 : f32
    %149 = vector.broadcast %cst_66 : f32 to vector<16x1xf32>
    %150 = arith.divf %148, %149 : vector<16x1xf32>
    %151 = vector.broadcast %150 : vector<16x1xf32> to vector<16x8xf32>
    %152 = arith.subf %146, %151 : vector<16x8xf32>
    %153 = arith.mulf %152, %152 : vector<16x8xf32>
    %cst_67 = arith.constant dense<0.000000e+00> : vector<16xf32>
    %154 = vector.multi_reduction <add>, %153, %cst_67 [1] : vector<16x8xf32> to vector<16xf32>
    %155 = vector.shape_cast %154 : vector<16xf32> to vector<16x1xf32>
    %cst_68 = arith.constant 8.000000e+00 : f32
    %156 = vector.broadcast %cst_68 : f32 to vector<16x1xf32>
    %157 = arith.divf %155, %156 : vector<16x1xf32>
    %cst_69 = arith.constant 9.99999974E-6 : f32
    %158 = vector.broadcast %cst_69 : f32 to vector<16x1xf32>
    %159 = arith.addf %157, %158 : vector<16x1xf32>
    %160 = math.rsqrt %159 : vector<16x1xf32>
    %161 = vector.broadcast %160 : vector<16x1xf32> to vector<16x8xf32>
    %162 = arith.mulf %152, %161 : vector<16x8xf32>
    %c16 = arith.constant 16 : index
    %c0_70 = arith.constant 0 : index
    %163 = vector.load %arg3[%c16, %c0_70] : memref<26x64xf32, #tpu.memory_space<vmem>>, vector<1x8xf32>
    %164 = vector.broadcast %163 : vector<1x8xf32> to vector<16x8xf32>
    %165 = arith.mulf %162, %164 : vector<16x8xf32>
    %c17 = arith.constant 17 : index
    %c0_71 = arith.constant 0 : index
    %166 = vector.load %arg3[%c17, %c0_71] : memref<26x64xf32, #tpu.memory_space<vmem>>, vector<1x8xf32>
    %167 = vector.broadcast %166 : vector<1x8xf32> to vector<16x8xf32>
    %168 = arith.addf %165, %167 : vector<16x8xf32>
    %169 = arith.truncf %168 : vector<16x8xf32> to vector<16x8xbf16>
    %c4 = arith.constant 4 : index
    %c0_72 = arith.constant 0 : index
    %c0_73 = arith.constant 0 : index
    %170 = vector.load %arg2[%c4, %c0_72, %c0_73] : memref<14x64x64xbf16, #tpu.memory_space<vmem>>, vector<1x8x16xbf16>
    %171 = vector.shape_cast %170 : vector<1x8x16xbf16> to vector<8x16xbf16>
    %cst_74 = arith.constant dense<0.000000e+00> : vector<16x16xf32>
    %172 = tpu.matmul %169, %171, %cst_74 {dimension_numbers = #tpu.dot_dimension_numbers<[1], [0], [0], [1], [0, 0, 1, 1], [], []>} : vector<16x8xbf16>, vector<8x16xbf16>, vector<16x16xf32> -> vector<16x16xf32>
    %c4_75 = arith.constant 4 : index
    %c0_76 = arith.constant 0 : index
    %173 = vector.load %arg3[%c4_75, %c0_76] : memref<26x64xf32, #tpu.memory_space<vmem>>, vector<1x16xf32>
    %174 = vector.broadcast %173 : vector<1x16xf32> to vector<16x16xf32>
    %175 = arith.addf %172, %174 : vector<16x16xf32>
    %cst_77 = arith.constant 5.000000e-01 : f32
    %176 = vector.broadcast %cst_77 : f32 to vector<16x16xf32>
    %177 = arith.mulf %176, %175 : vector<16x16xf32>
    %cst_78 = arith.constant 4.471500e-02 : f32
    %178 = vector.broadcast %cst_78 : f32 to vector<16x16xf32>
    %179 = arith.mulf %178, %175 : vector<16x16xf32>
    %180 = arith.mulf %179, %175 : vector<16x16xf32>
    %181 = arith.mulf %180, %175 : vector<16x16xf32>
    %182 = arith.addf %175, %181 : vector<16x16xf32>
    %cst_79 = arith.constant 0.797884583 : f32
    %183 = vector.broadcast %cst_79 : f32 to vector<16x16xf32>
    %184 = arith.mulf %183, %182 : vector<16x16xf32>
    %185 = math.tanh %184 : vector<16x16xf32>
    %cst_80 = arith.constant 1.000000e+00 : f32
    %186 = vector.broadcast %cst_80 : f32 to vector<16x16xf32>
    %187 = arith.addf %186, %185 : vector<16x16xf32>
    %188 = arith.mulf %177, %187 : vector<16x16xf32>
    %189 = arith.truncf %188 : vector<16x16xf32> to vector<16x16xbf16>
    %c5 = arith.constant 5 : index
    %c0_81 = arith.constant 0 : index
    %c0_82 = arith.constant 0 : index
    %190 = vector.load %arg2[%c5, %c0_81, %c0_82] : memref<14x64x64xbf16, #tpu.memory_space<vmem>>, vector<1x16x4xbf16>
    %191 = vector.shape_cast %190 : vector<1x16x4xbf16> to vector<16x4xbf16>
    %cst_83 = arith.constant dense<0.000000e+00> : vector<16x4xf32>
    %192 = tpu.matmul %189, %191, %cst_83 {dimension_numbers = #tpu.dot_dimension_numbers<[1], [0], [0], [1], [0, 0, 1, 1], [], []>} : vector<16x16xbf16>, vector<16x4xbf16>, vector<16x4xf32> -> vector<16x4xf32>
    %c5_84 = arith.constant 5 : index
    %c0_85 = arith.constant 0 : index
    %193 = vector.load %arg3[%c5_84, %c0_85] : memref<26x64xf32, #tpu.memory_space<vmem>>, vector<1x4xf32>
    %194 = vector.broadcast %193 : vector<1x4xf32> to vector<16x4xf32>
    %195 = arith.addf %192, %194 : vector<16x4xf32>
    %196 = arith.truncf %195 : vector<16x4xf32> to vector<16x4xbf16>
    %cst_86 = arith.constant dense<0.000000e+00> : vector<32x4xf32>
    %197 = tpu.matmul %1, %196, %cst_86 {dimension_numbers = #tpu.dot_dimension_numbers<[1], [0], [0], [1], [0, 0, 1, 1], [], []>} : vector<32x16xbf16>, vector<16x4xbf16>, vector<32x4xf32> -> vector<32x4xf32>
    %198 = vector.broadcast %4 : vector<32x1xf32> to vector<32x4xf32>
    %199 = arith.addf %197, %198 : vector<32x4xf32>
    %cst_87 = arith.constant 5.000000e-01 : f32
    %200 = vector.broadcast %cst_87 : f32 to vector<32x4xf32>
    %201 = arith.mulf %200, %199 : vector<32x4xf32>
    %cst_88 = arith.constant 4.471500e-02 : f32
    %202 = vector.broadcast %cst_88 : f32 to vector<32x4xf32>
    %203 = arith.mulf %202, %199 : vector<32x4xf32>
    %204 = arith.mulf %203, %199 : vector<32x4xf32>
    %205 = arith.mulf %204, %199 : vector<32x4xf32>
    %206 = arith.addf %199, %205 : vector<32x4xf32>
    %cst_89 = arith.constant 0.797884583 : f32
    %207 = vector.broadcast %cst_89 : f32 to vector<32x4xf32>
    %208 = arith.mulf %207, %206 : vector<32x4xf32>
    %209 = math.tanh %208 : vector<32x4xf32>
    %cst_90 = arith.constant 1.000000e+00 : f32
    %210 = vector.broadcast %cst_90 : f32 to vector<32x4xf32>
    %211 = arith.addf %210, %209 : vector<32x4xf32>
    %212 = arith.mulf %201, %211 : vector<32x4xf32>
    %213 = arith.truncf %212 : vector<32x4xf32> to vector<32x4xbf16>
    %cst_91 = arith.constant dense<0.000000e+00> : vector<16x4xf32>
    %214 = tpu.matmul %3, %213, %cst_91 {dimension_numbers = #tpu.dot_dimension_numbers<[1], [0], [0], [1], [0, 0, 1, 1], [], []>} : vector<16x32xbf16>, vector<32x4xbf16>, vector<16x4xf32> -> vector<16x4xf32>
    %215 = vector.broadcast %5 : vector<16x1xf32> to vector<16x4xf32>
    %216 = arith.addf %214, %215 : vector<16x4xf32>
    %cst_92 = arith.constant dense<0.000000e+00> : vector<16xf32>
    %217 = vector.multi_reduction <add>, %216, %cst_92 [1] : vector<16x4xf32> to vector<16xf32>
    %218 = vector.shape_cast %217 : vector<16xf32> to vector<16x1xf32>
    %cst_93 = arith.constant 4.000000e+00 : f32
    %219 = vector.broadcast %cst_93 : f32 to vector<16x1xf32>
    %220 = arith.divf %218, %219 : vector<16x1xf32>
    %221 = vector.broadcast %220 : vector<16x1xf32> to vector<16x4xf32>
    %222 = arith.subf %216, %221 : vector<16x4xf32>
    %223 = arith.mulf %222, %222 : vector<16x4xf32>
    %cst_94 = arith.constant dense<0.000000e+00> : vector<16xf32>
    %224 = vector.multi_reduction <add>, %223, %cst_94 [1] : vector<16x4xf32> to vector<16xf32>
    %225 = vector.shape_cast %224 : vector<16xf32> to vector<16x1xf32>
    %cst_95 = arith.constant 4.000000e+00 : f32
    %226 = vector.broadcast %cst_95 : f32 to vector<16x1xf32>
    %227 = arith.divf %225, %226 : vector<16x1xf32>
    %cst_96 = arith.constant 9.99999974E-6 : f32
    %228 = vector.broadcast %cst_96 : f32 to vector<16x1xf32>
    %229 = arith.addf %227, %228 : vector<16x1xf32>
    %230 = math.rsqrt %229 : vector<16x1xf32>
    %231 = vector.broadcast %230 : vector<16x1xf32> to vector<16x4xf32>
    %232 = arith.mulf %222, %231 : vector<16x4xf32>
    %c18 = arith.constant 18 : index
    %c0_97 = arith.constant 0 : index
    %233 = vector.load %arg3[%c18, %c0_97] : memref<26x64xf32, #tpu.memory_space<vmem>>, vector<1x4xf32>
    %234 = vector.broadcast %233 : vector<1x4xf32> to vector<16x4xf32>
    %235 = arith.mulf %232, %234 : vector<16x4xf32>
    %c19 = arith.constant 19 : index
    %c0_98 = arith.constant 0 : index
    %236 = vector.load %arg3[%c19, %c0_98] : memref<26x64xf32, #tpu.memory_space<vmem>>, vector<1x4xf32>
    %237 = vector.broadcast %236 : vector<1x4xf32> to vector<16x4xf32>
    %238 = arith.addf %235, %237 : vector<16x4xf32>
    %239 = arith.truncf %238 : vector<16x4xf32> to vector<16x4xbf16>
    %c6 = arith.constant 6 : index
    %c0_99 = arith.constant 0 : index
    %c0_100 = arith.constant 0 : index
    %240 = vector.load %arg2[%c6, %c0_99, %c0_100] : memref<14x64x64xbf16, #tpu.memory_space<vmem>>, vector<1x4x16xbf16>
    %241 = vector.shape_cast %240 : vector<1x4x16xbf16> to vector<4x16xbf16>
    %cst_101 = arith.constant dense<0.000000e+00> : vector<16x16xf32>
    %242 = tpu.matmul %239, %241, %cst_101 {dimension_numbers = #tpu.dot_dimension_numbers<[1], [0], [0], [1], [0, 0, 1, 1], [], []>} : vector<16x4xbf16>, vector<4x16xbf16>, vector<16x16xf32> -> vector<16x16xf32>
    %c6_102 = arith.constant 6 : index
    %c0_103 = arith.constant 0 : index
    %243 = vector.load %arg3[%c6_102, %c0_103] : memref<26x64xf32, #tpu.memory_space<vmem>>, vector<1x16xf32>
    %244 = vector.broadcast %243 : vector<1x16xf32> to vector<16x16xf32>
    %245 = arith.addf %242, %244 : vector<16x16xf32>
    %cst_104 = arith.constant 5.000000e-01 : f32
    %246 = vector.broadcast %cst_104 : f32 to vector<16x16xf32>
    %247 = arith.mulf %246, %245 : vector<16x16xf32>
    %cst_105 = arith.constant 4.471500e-02 : f32
    %248 = vector.broadcast %cst_105 : f32 to vector<16x16xf32>
    %249 = arith.mulf %248, %245 : vector<16x16xf32>
    %250 = arith.mulf %249, %245 : vector<16x16xf32>
    %251 = arith.mulf %250, %245 : vector<16x16xf32>
    %252 = arith.addf %245, %251 : vector<16x16xf32>
    %cst_106 = arith.constant 0.797884583 : f32
    %253 = vector.broadcast %cst_106 : f32 to vector<16x16xf32>
    %254 = arith.mulf %253, %252 : vector<16x16xf32>
    %255 = math.tanh %254 : vector<16x16xf32>
    %cst_107 = arith.constant 1.000000e+00 : f32
    %256 = vector.broadcast %cst_107 : f32 to vector<16x16xf32>
    %257 = arith.addf %256, %255 : vector<16x16xf32>
    %258 = arith.mulf %247, %257 : vector<16x16xf32>
    %259 = arith.truncf %258 : vector<16x16xf32> to vector<16x16xbf16>
    %c7 = arith.constant 7 : index
    %c0_108 = arith.constant 0 : index
    %c0_109 = arith.constant 0 : index
    %260 = vector.load %arg2[%c7, %c0_108, %c0_109] : memref<14x64x64xbf16, #tpu.memory_space<vmem>>, vector<1x16x8xbf16>
    %261 = vector.shape_cast %260 : vector<1x16x8xbf16> to vector<16x8xbf16>
    %cst_110 = arith.constant dense<0.000000e+00> : vector<16x8xf32>
    %262 = tpu.matmul %259, %261, %cst_110 {dimension_numbers = #tpu.dot_dimension_numbers<[1], [0], [0], [1], [0, 0, 1, 1], [], []>} : vector<16x16xbf16>, vector<16x8xbf16>, vector<16x8xf32> -> vector<16x8xf32>
    %c7_111 = arith.constant 7 : index
    %c0_112 = arith.constant 0 : index
    %263 = vector.load %arg3[%c7_111, %c0_112] : memref<26x64xf32, #tpu.memory_space<vmem>>, vector<1x8xf32>
    %264 = vector.broadcast %263 : vector<1x8xf32> to vector<16x8xf32>
    %265 = arith.addf %262, %264 : vector<16x8xf32>
    %cst_113 = arith.constant dense<0.000000e+00> : vector<16xf32>
    %266 = vector.multi_reduction <add>, %265, %cst_113 [1] : vector<16x8xf32> to vector<16xf32>
    %267 = vector.shape_cast %266 : vector<16xf32> to vector<16x1xf32>
    %cst_114 = arith.constant 8.000000e+00 : f32
    %268 = vector.broadcast %cst_114 : f32 to vector<16x1xf32>
    %269 = arith.divf %267, %268 : vector<16x1xf32>
    %270 = vector.broadcast %269 : vector<16x1xf32> to vector<16x8xf32>
    %271 = arith.subf %265, %270 : vector<16x8xf32>
    %272 = arith.mulf %271, %271 : vector<16x8xf32>
    %cst_115 = arith.constant dense<0.000000e+00> : vector<16xf32>
    %273 = vector.multi_reduction <add>, %272, %cst_115 [1] : vector<16x8xf32> to vector<16xf32>
    %274 = vector.shape_cast %273 : vector<16xf32> to vector<16x1xf32>
    %cst_116 = arith.constant 8.000000e+00 : f32
    %275 = vector.broadcast %cst_116 : f32 to vector<16x1xf32>
    %276 = arith.divf %274, %275 : vector<16x1xf32>
    %cst_117 = arith.constant 9.99999974E-6 : f32
    %277 = vector.broadcast %cst_117 : f32 to vector<16x1xf32>
    %278 = arith.addf %276, %277 : vector<16x1xf32>
    %279 = math.rsqrt %278 : vector<16x1xf32>
    %280 = vector.broadcast %279 : vector<16x1xf32> to vector<16x8xf32>
    %281 = arith.mulf %271, %280 : vector<16x8xf32>
    %c20 = arith.constant 20 : index
    %c0_118 = arith.constant 0 : index
    %282 = vector.load %arg3[%c20, %c0_118] : memref<26x64xf32, #tpu.memory_space<vmem>>, vector<1x8xf32>
    %283 = vector.broadcast %282 : vector<1x8xf32> to vector<16x8xf32>
    %284 = arith.mulf %281, %283 : vector<16x8xf32>
    %c21 = arith.constant 21 : index
    %c0_119 = arith.constant 0 : index
    %285 = vector.load %arg3[%c21, %c0_119] : memref<26x64xf32, #tpu.memory_space<vmem>>, vector<1x8xf32>
    %286 = vector.broadcast %285 : vector<1x8xf32> to vector<16x8xf32>
    %287 = arith.addf %284, %286 : vector<16x8xf32>
    %288 = arith.truncf %287 : vector<16x8xf32> to vector<16x8xbf16>
    %cst_120 = arith.constant dense<0.000000e+00> : vector<32x8xf32>
    %289 = tpu.matmul %1, %288, %cst_120 {dimension_numbers = #tpu.dot_dimension_numbers<[1], [0], [0], [1], [0, 0, 1, 1], [], []>} : vector<32x16xbf16>, vector<16x8xbf16>, vector<32x8xf32> -> vector<32x8xf32>
    %290 = vector.broadcast %4 : vector<32x1xf32> to vector<32x8xf32>
    %291 = arith.addf %289, %290 : vector<32x8xf32>
    %cst_121 = arith.constant 5.000000e-01 : f32
    %292 = vector.broadcast %cst_121 : f32 to vector<32x8xf32>
    %293 = arith.mulf %292, %291 : vector<32x8xf32>
    %cst_122 = arith.constant 4.471500e-02 : f32
    %294 = vector.broadcast %cst_122 : f32 to vector<32x8xf32>
    %295 = arith.mulf %294, %291 : vector<32x8xf32>
    %296 = arith.mulf %295, %291 : vector<32x8xf32>
    %297 = arith.mulf %296, %291 : vector<32x8xf32>
    %298 = arith.addf %291, %297 : vector<32x8xf32>
    %cst_123 = arith.constant 0.797884583 : f32
    %299 = vector.broadcast %cst_123 : f32 to vector<32x8xf32>
    %300 = arith.mulf %299, %298 : vector<32x8xf32>
    %301 = math.tanh %300 : vector<32x8xf32>
    %cst_124 = arith.constant 1.000000e+00 : f32
    %302 = vector.broadcast %cst_124 : f32 to vector<32x8xf32>
    %303 = arith.addf %302, %301 : vector<32x8xf32>
    %304 = arith.mulf %293, %303 : vector<32x8xf32>
    %305 = arith.truncf %304 : vector<32x8xf32> to vector<32x8xbf16>
    %cst_125 = arith.constant dense<0.000000e+00> : vector<16x8xf32>
    %306 = tpu.matmul %3, %305, %cst_125 {dimension_numbers = #tpu.dot_dimension_numbers<[1], [0], [0], [1], [0, 0, 1, 1], [], []>} : vector<16x32xbf16>, vector<32x8xbf16>, vector<16x8xf32> -> vector<16x8xf32>
    %307 = vector.broadcast %5 : vector<16x1xf32> to vector<16x8xf32>
    %308 = arith.addf %306, %307 : vector<16x8xf32>
    %309 = arith.addf %308, %168 : vector<16x8xf32>
    %310 = arith.truncf %309 : vector<16x8xf32> to vector<16x8xbf16>
    %c8 = arith.constant 8 : index
    %c0_126 = arith.constant 0 : index
    %c0_127 = arith.constant 0 : index
    %311 = vector.load %arg2[%c8, %c0_126, %c0_127] : memref<14x64x64xbf16, #tpu.memory_space<vmem>>, vector<1x8x32xbf16>
    %312 = vector.shape_cast %311 : vector<1x8x32xbf16> to vector<8x32xbf16>
    %cst_128 = arith.constant dense<0.000000e+00> : vector<16x32xf32>
    %313 = tpu.matmul %310, %312, %cst_128 {dimension_numbers = #tpu.dot_dimension_numbers<[1], [0], [0], [1], [0, 0, 1, 1], [], []>} : vector<16x8xbf16>, vector<8x32xbf16>, vector<16x32xf32> -> vector<16x32xf32>
    %c8_129 = arith.constant 8 : index
    %c0_130 = arith.constant 0 : index
    %314 = vector.load %arg3[%c8_129, %c0_130] : memref<26x64xf32, #tpu.memory_space<vmem>>, vector<1x32xf32>
    %315 = vector.broadcast %314 : vector<1x32xf32> to vector<16x32xf32>
    %316 = arith.addf %313, %315 : vector<16x32xf32>
    %cst_131 = arith.constant 5.000000e-01 : f32
    %317 = vector.broadcast %cst_131 : f32 to vector<16x32xf32>
    %318 = arith.mulf %317, %316 : vector<16x32xf32>
    %cst_132 = arith.constant 4.471500e-02 : f32
    %319 = vector.broadcast %cst_132 : f32 to vector<16x32xf32>
    %320 = arith.mulf %319, %316 : vector<16x32xf32>
    %321 = arith.mulf %320, %316 : vector<16x32xf32>
    %322 = arith.mulf %321, %316 : vector<16x32xf32>
    %323 = arith.addf %316, %322 : vector<16x32xf32>
    %cst_133 = arith.constant 0.797884583 : f32
    %324 = vector.broadcast %cst_133 : f32 to vector<16x32xf32>
    %325 = arith.mulf %324, %323 : vector<16x32xf32>
    %326 = math.tanh %325 : vector<16x32xf32>
    %cst_134 = arith.constant 1.000000e+00 : f32
    %327 = vector.broadcast %cst_134 : f32 to vector<16x32xf32>
    %328 = arith.addf %327, %326 : vector<16x32xf32>
    %329 = arith.mulf %318, %328 : vector<16x32xf32>
    %330 = arith.truncf %329 : vector<16x32xf32> to vector<16x32xbf16>
    %c9 = arith.constant 9 : index
    %c0_135 = arith.constant 0 : index
    %c0_136 = arith.constant 0 : index
    %331 = vector.load %arg2[%c9, %c0_135, %c0_136] : memref<14x64x64xbf16, #tpu.memory_space<vmem>>, vector<1x32x16xbf16>
    %332 = vector.shape_cast %331 : vector<1x32x16xbf16> to vector<32x16xbf16>
    %cst_137 = arith.constant dense<0.000000e+00> : vector<16x16xf32>
    %333 = tpu.matmul %330, %332, %cst_137 {dimension_numbers = #tpu.dot_dimension_numbers<[1], [0], [0], [1], [0, 0, 1, 1], [], []>} : vector<16x32xbf16>, vector<32x16xbf16>, vector<16x16xf32> -> vector<16x16xf32>
    %c9_138 = arith.constant 9 : index
    %c0_139 = arith.constant 0 : index
    %334 = vector.load %arg3[%c9_138, %c0_139] : memref<26x64xf32, #tpu.memory_space<vmem>>, vector<1x16xf32>
    %335 = vector.broadcast %334 : vector<1x16xf32> to vector<16x16xf32>
    %336 = arith.addf %333, %335 : vector<16x16xf32>
    %cst_140 = arith.constant dense<0.000000e+00> : vector<16xf32>
    %337 = vector.multi_reduction <add>, %336, %cst_140 [1] : vector<16x16xf32> to vector<16xf32>
    %338 = vector.shape_cast %337 : vector<16xf32> to vector<16x1xf32>
    %cst_141 = arith.constant 1.600000e+01 : f32
    %339 = vector.broadcast %cst_141 : f32 to vector<16x1xf32>
    %340 = arith.divf %338, %339 : vector<16x1xf32>
    %341 = vector.broadcast %340 : vector<16x1xf32> to vector<16x16xf32>
    %342 = arith.subf %336, %341 : vector<16x16xf32>
    %343 = arith.mulf %342, %342 : vector<16x16xf32>
    %cst_142 = arith.constant dense<0.000000e+00> : vector<16xf32>
    %344 = vector.multi_reduction <add>, %343, %cst_142 [1] : vector<16x16xf32> to vector<16xf32>
    %345 = vector.shape_cast %344 : vector<16xf32> to vector<16x1xf32>
    %cst_143 = arith.constant 1.600000e+01 : f32
    %346 = vector.broadcast %cst_143 : f32 to vector<16x1xf32>
    %347 = arith.divf %345, %346 : vector<16x1xf32>
    %cst_144 = arith.constant 9.99999974E-6 : f32
    %348 = vector.broadcast %cst_144 : f32 to vector<16x1xf32>
    %349 = arith.addf %347, %348 : vector<16x1xf32>
    %350 = math.rsqrt %349 : vector<16x1xf32>
    %351 = vector.broadcast %350 : vector<16x1xf32> to vector<16x16xf32>
    %352 = arith.mulf %342, %351 : vector<16x16xf32>
    %c22 = arith.constant 22 : index
    %c0_145 = arith.constant 0 : index
    %353 = vector.load %arg3[%c22, %c0_145] : memref<26x64xf32, #tpu.memory_space<vmem>>, vector<1x16xf32>
    %354 = vector.broadcast %353 : vector<1x16xf32> to vector<16x16xf32>
    %355 = arith.mulf %352, %354 : vector<16x16xf32>
    %c23 = arith.constant 23 : index
    %c0_146 = arith.constant 0 : index
    %356 = vector.load %arg3[%c23, %c0_146] : memref<26x64xf32, #tpu.memory_space<vmem>>, vector<1x16xf32>
    %357 = vector.broadcast %356 : vector<1x16xf32> to vector<16x16xf32>
    %358 = arith.addf %355, %357 : vector<16x16xf32>
    %359 = arith.truncf %358 : vector<16x16xf32> to vector<16x16xbf16>
    %cst_147 = arith.constant dense<0.000000e+00> : vector<32x16xf32>
    %360 = tpu.matmul %1, %359, %cst_147 {dimension_numbers = #tpu.dot_dimension_numbers<[1], [0], [0], [1], [0, 0, 1, 1], [], []>} : vector<32x16xbf16>, vector<16x16xbf16>, vector<32x16xf32> -> vector<32x16xf32>
    %361 = vector.broadcast %4 : vector<32x1xf32> to vector<32x16xf32>
    %362 = arith.addf %360, %361 : vector<32x16xf32>
    %cst_148 = arith.constant 5.000000e-01 : f32
    %363 = vector.broadcast %cst_148 : f32 to vector<32x16xf32>
    %364 = arith.mulf %363, %362 : vector<32x16xf32>
    %cst_149 = arith.constant 4.471500e-02 : f32
    %365 = vector.broadcast %cst_149 : f32 to vector<32x16xf32>
    %366 = arith.mulf %365, %362 : vector<32x16xf32>
    %367 = arith.mulf %366, %362 : vector<32x16xf32>
    %368 = arith.mulf %367, %362 : vector<32x16xf32>
    %369 = arith.addf %362, %368 : vector<32x16xf32>
    %cst_150 = arith.constant 0.797884583 : f32
    %370 = vector.broadcast %cst_150 : f32 to vector<32x16xf32>
    %371 = arith.mulf %370, %369 : vector<32x16xf32>
    %372 = math.tanh %371 : vector<32x16xf32>
    %cst_151 = arith.constant 1.000000e+00 : f32
    %373 = vector.broadcast %cst_151 : f32 to vector<32x16xf32>
    %374 = arith.addf %373, %372 : vector<32x16xf32>
    %375 = arith.mulf %364, %374 : vector<32x16xf32>
    %376 = arith.truncf %375 : vector<32x16xf32> to vector<32x16xbf16>
    %cst_152 = arith.constant dense<0.000000e+00> : vector<16x16xf32>
    %377 = tpu.matmul %3, %376, %cst_152 {dimension_numbers = #tpu.dot_dimension_numbers<[1], [0], [0], [1], [0, 0, 1, 1], [], []>} : vector<16x32xbf16>, vector<32x16xbf16>, vector<16x16xf32> -> vector<16x16xf32>
    %378 = vector.broadcast %5 : vector<16x1xf32> to vector<16x16xf32>
    %379 = arith.addf %377, %378 : vector<16x16xf32>
    %380 = arith.addf %379, %98 : vector<16x16xf32>
    %381 = arith.truncf %380 : vector<16x16xf32> to vector<16x16xbf16>
    %c10 = arith.constant 10 : index
    %c0_153 = arith.constant 0 : index
    %c0_154 = arith.constant 0 : index
    %382 = vector.load %arg2[%c10, %c0_153, %c0_154] : memref<14x64x64xbf16, #tpu.memory_space<vmem>>, vector<1x16x64xbf16>
    %383 = vector.shape_cast %382 : vector<1x16x64xbf16> to vector<16x64xbf16>
    %cst_155 = arith.constant dense<0.000000e+00> : vector<16x64xf32>
    %384 = tpu.matmul %381, %383, %cst_155 {dimension_numbers = #tpu.dot_dimension_numbers<[1], [0], [0], [1], [0, 0, 1, 1], [], []>} : vector<16x16xbf16>, vector<16x64xbf16>, vector<16x64xf32> -> vector<16x64xf32>
    %c10_156 = arith.constant 10 : index
    %c0_157 = arith.constant 0 : index
    %385 = vector.load %arg3[%c10_156, %c0_157] : memref<26x64xf32, #tpu.memory_space<vmem>>, vector<1x64xf32>
    %386 = vector.broadcast %385 : vector<1x64xf32> to vector<16x64xf32>
    %387 = arith.addf %384, %386 : vector<16x64xf32>
    %cst_158 = arith.constant 5.000000e-01 : f32
    %388 = vector.broadcast %cst_158 : f32 to vector<16x64xf32>
    %389 = arith.mulf %388, %387 : vector<16x64xf32>
    %cst_159 = arith.constant 4.471500e-02 : f32
    %390 = vector.broadcast %cst_159 : f32 to vector<16x64xf32>
    %391 = arith.mulf %390, %387 : vector<16x64xf32>
    %392 = arith.mulf %391, %387 : vector<16x64xf32>
    %393 = arith.mulf %392, %387 : vector<16x64xf32>
    %394 = arith.addf %387, %393 : vector<16x64xf32>
    %cst_160 = arith.constant 0.797884583 : f32
    %395 = vector.broadcast %cst_160 : f32 to vector<16x64xf32>
    %396 = arith.mulf %395, %394 : vector<16x64xf32>
    %397 = math.tanh %396 : vector<16x64xf32>
    %cst_161 = arith.constant 1.000000e+00 : f32
    %398 = vector.broadcast %cst_161 : f32 to vector<16x64xf32>
    %399 = arith.addf %398, %397 : vector<16x64xf32>
    %400 = arith.mulf %389, %399 : vector<16x64xf32>
    %401 = arith.truncf %400 : vector<16x64xf32> to vector<16x64xbf16>
    %c11 = arith.constant 11 : index
    %c0_162 = arith.constant 0 : index
    %c0_163 = arith.constant 0 : index
    %402 = vector.load %arg2[%c11, %c0_162, %c0_163] : memref<14x64x64xbf16, #tpu.memory_space<vmem>>, vector<1x64x32xbf16>
    %403 = vector.shape_cast %402 : vector<1x64x32xbf16> to vector<64x32xbf16>
    %cst_164 = arith.constant dense<0.000000e+00> : vector<16x32xf32>
    %404 = tpu.matmul %401, %403, %cst_164 {dimension_numbers = #tpu.dot_dimension_numbers<[1], [0], [0], [1], [0, 0, 1, 1], [], []>} : vector<16x64xbf16>, vector<64x32xbf16>, vector<16x32xf32> -> vector<16x32xf32>
    %c11_165 = arith.constant 11 : index
    %c0_166 = arith.constant 0 : index
    %405 = vector.load %arg3[%c11_165, %c0_166] : memref<26x64xf32, #tpu.memory_space<vmem>>, vector<1x32xf32>
    %406 = vector.broadcast %405 : vector<1x32xf32> to vector<16x32xf32>
    %407 = arith.addf %404, %406 : vector<16x32xf32>
    %cst_167 = arith.constant dense<0.000000e+00> : vector<16xf32>
    %408 = vector.multi_reduction <add>, %407, %cst_167 [1] : vector<16x32xf32> to vector<16xf32>
    %409 = vector.shape_cast %408 : vector<16xf32> to vector<16x1xf32>
    %cst_168 = arith.constant 3.200000e+01 : f32
    %410 = vector.broadcast %cst_168 : f32 to vector<16x1xf32>
    %411 = arith.divf %409, %410 : vector<16x1xf32>
    %412 = vector.broadcast %411 : vector<16x1xf32> to vector<16x32xf32>
    %413 = arith.subf %407, %412 : vector<16x32xf32>
    %414 = arith.mulf %413, %413 : vector<16x32xf32>
    %cst_169 = arith.constant dense<0.000000e+00> : vector<16xf32>
    %415 = vector.multi_reduction <add>, %414, %cst_169 [1] : vector<16x32xf32> to vector<16xf32>
    %416 = vector.shape_cast %415 : vector<16xf32> to vector<16x1xf32>
    %cst_170 = arith.constant 3.200000e+01 : f32
    %417 = vector.broadcast %cst_170 : f32 to vector<16x1xf32>
    %418 = arith.divf %416, %417 : vector<16x1xf32>
    %cst_171 = arith.constant 9.99999974E-6 : f32
    %419 = vector.broadcast %cst_171 : f32 to vector<16x1xf32>
    %420 = arith.addf %418, %419 : vector<16x1xf32>
    %421 = math.rsqrt %420 : vector<16x1xf32>
    %422 = vector.broadcast %421 : vector<16x1xf32> to vector<16x32xf32>
    %423 = arith.mulf %413, %422 : vector<16x32xf32>
    %c24 = arith.constant 24 : index
    %c0_172 = arith.constant 0 : index
    %424 = vector.load %arg3[%c24, %c0_172] : memref<26x64xf32, #tpu.memory_space<vmem>>, vector<1x32xf32>
    %425 = vector.broadcast %424 : vector<1x32xf32> to vector<16x32xf32>
    %426 = arith.mulf %423, %425 : vector<16x32xf32>
    %c25 = arith.constant 25 : index
    %c0_173 = arith.constant 0 : index
    %427 = vector.load %arg3[%c25, %c0_173] : memref<26x64xf32, #tpu.memory_space<vmem>>, vector<1x32xf32>
    %428 = vector.broadcast %427 : vector<1x32xf32> to vector<16x32xf32>
    %429 = arith.addf %426, %428 : vector<16x32xf32>
    %430 = arith.truncf %429 : vector<16x32xf32> to vector<16x32xbf16>
    %cst_174 = arith.constant dense<0.000000e+00> : vector<32x32xf32>
    %431 = tpu.matmul %1, %430, %cst_174 {dimension_numbers = #tpu.dot_dimension_numbers<[1], [0], [0], [1], [0, 0, 1, 1], [], []>} : vector<32x16xbf16>, vector<16x32xbf16>, vector<32x32xf32> -> vector<32x32xf32>
    %432 = vector.broadcast %4 : vector<32x1xf32> to vector<32x32xf32>
    %433 = arith.addf %431, %432 : vector<32x32xf32>
    %cst_175 = arith.constant 5.000000e-01 : f32
    %434 = vector.broadcast %cst_175 : f32 to vector<32x32xf32>
    %435 = arith.mulf %434, %433 : vector<32x32xf32>
    %cst_176 = arith.constant 4.471500e-02 : f32
    %436 = vector.broadcast %cst_176 : f32 to vector<32x32xf32>
    %437 = arith.mulf %436, %433 : vector<32x32xf32>
    %438 = arith.mulf %437, %433 : vector<32x32xf32>
    %439 = arith.mulf %438, %433 : vector<32x32xf32>
    %440 = arith.addf %433, %439 : vector<32x32xf32>
    %cst_177 = arith.constant 0.797884583 : f32
    %441 = vector.broadcast %cst_177 : f32 to vector<32x32xf32>
    %442 = arith.mulf %441, %440 : vector<32x32xf32>
    %443 = math.tanh %442 : vector<32x32xf32>
    %cst_178 = arith.constant 1.000000e+00 : f32
    %444 = vector.broadcast %cst_178 : f32 to vector<32x32xf32>
    %445 = arith.addf %444, %443 : vector<32x32xf32>
    %446 = arith.mulf %435, %445 : vector<32x32xf32>
    %447 = arith.truncf %446 : vector<32x32xf32> to vector<32x32xbf16>
    %cst_179 = arith.constant dense<0.000000e+00> : vector<16x32xf32>
    %448 = tpu.matmul %3, %447, %cst_179 {dimension_numbers = #tpu.dot_dimension_numbers<[1], [0], [0], [1], [0, 0, 1, 1], [], []>} : vector<16x32xbf16>, vector<32x32xbf16>, vector<16x32xf32> -> vector<16x32xf32>
    %449 = vector.broadcast %5 : vector<16x1xf32> to vector<16x32xf32>
    %450 = arith.addf %448, %449 : vector<16x32xf32>
    %451 = arith.addf %450, %28 : vector<16x32xf32>
    %c0_180 = arith.constant 0 : index
    %c0_181 = arith.constant 0 : index
    %452 = vector.load %arg6[%c0_180, %c0_181] : memref<16x32xf32, #tpu.memory_space<vmem>>, vector<16x32xf32>
    tpu.vector_store %arg6[%c0_180, %c0_181], %451 {strides = array<i32>} : memref<16x32xf32, #tpu.memory_space<vmem>>, vector<16x32xf32>,
    return
  }
  func.func @transform_0(%arg0: i32) -> (i32, i32) {
    %c0_i32 = arith.constant 0 : i32
    %c0_i32_0 = arith.constant 0 : i32
    return %arg0, %c0_i32 : i32, i32
  }
  func.func @transform_1(%arg0: i32) -> (i32, i32, i32) {
    %c0_i32 = arith.constant 0 : i32
    %c0_i32_0 = arith.constant 0 : i32
    %c0_i32_1 = arith.constant 0 : i32
    %c0_i32_2 = arith.constant 0 : i32
    return %c0_i32, %c0_i32_0, %c0_i32_1 : i32, i32, i32
  }
  func.func @transform_2(%arg0: i32) -> (i32, i32) {
    %c0_i32 = arith.constant 0 : i32
    %c0_i32_0 = arith.constant 0 : i32
    %c0_i32_1 = arith.constant 0 : i32
    return %c0_i32, %c0_i32_0 : i32, i32
  }
  func.func @transform_3(%arg0: i32) -> (i32, i32) {
    %c0_i32 = arith.constant 0 : i32
    %c0_i32_0 = arith.constant 0 : i32
    %c0_i32_1 = arith.constant 0 : i32
    return %c0_i32, %c0_i32_0 : i32, i32
  }
  func.func @transform_4(%arg0: i32) -> (i32, i32) {
    %c0_i32 = arith.constant 0 : i32
    %c0_i32_0 = arith.constant 0 : i32
    %c0_i32_1 = arith.constant 0 : i32
    return %c0_i32, %c0_i32_0 : i32, i32
  }
  func.func @transform_5(%arg0: i32) -> (i32, i32) {
    %c0_i32 = arith.constant 0 : i32
    %c0_i32_0 = arith.constant 0 : i32
    return %arg0, %c0_i32 : i32, i32
  }
}

</mosaic_0001>

<bundles_post_ra>
// kernel: tile.13
= control target key start
LH: loop header
LB: loop body
LE: loop exit
PB: predicated region body
PF: predicated region fallthrough
CT: control target
= control target key end

     0   :  { %s22_s0 = inlined_call_operand.vmem [shape: f32[16], index: 0, kind: input, shape index: {}]   ;;  %s23_s1 = inlined_call_operand.vmem [shape: f32[2,16], index: 1, kind: output, shape index: {}]  }
   0x1   :  { %v4_v0 = vld [vmem:[%s22_s0] ss:$0 sm:$0xff] }
   0x2   :  { %5 = vst [vmem:[%s23_s1] sm:$0x3] %v4_v0 }

// kernel: tile.0
= control target key start
LH: loop header
LB: loop body
LE: loop exit
PB: predicated region body
PF: predicated region fallthrough
CT: control target
= control target key end

     0   :  { %s131_s8 = smov 125   ;;  %s132_s9 = smov 126   ;;  %vm8_vm0 = vcmask 7168   ;;  %s222_s0 = inlined_call_operand.vmem [shape: f32[2,16], index: 0, kind: input, shape index: {}]   ;;  %s223_s1 = inlined_call_operand.vmem [shape: f32[32,1], index: 1, kind: output, shape index: {}]  }
   0x1   :  { %v5_v0 = vld [vmem:[%s222_s0] sm:$0x3]  ;;  %s130_s0 = smov 127   ;;  %s133_s10 = smov 124  }
   0x2   :  { %6 = vst [vmem:[#allocation0] sm:$0x3] %v5_v0  ;;  %s134_s11 = smov 123   ;;  %s135_s12 = smov 122  }
   0x3   :  { %s136_s13 = smov 121   ;;  %s137_s14 = smov 120  }
   0x4   :  { %s138_s17 = smov 119   ;;  %s139_s18 = smov 118  }
   0x5   :  { %s140_s19 = smov 117   ;;  %s141_s20 = smov 116  }
   0x6   :  { %s142_s21 = smov 115   ;;  %s143_s22 = smov 114  }
   0x7   :  { %s144_s23 = smov 113  }
   0x9   :  { %v10_v1 = vld [vmem:[#allocation0] sm:$0x3]  }
   0xa   :  { %v22_v2 = vld [vmem:[#allocation0] sm:$0x3]   ;;  %11 = vrot.lane.b32.xlu0 %v10_v1, %s130_s0 }
   0xb   :  { %23 = vrot.lane.b32.xlu1 %v22_v2, %s131_s8  ;;  %v16_v3 = vld [vmem:[#allocation0] sm:$0x3]  }
   0xc   :  { %v28_v4 = vld [vmem:[#allocation0] sm:$0x3]  }
   0xd   :  { %v34_v5 = vld [vmem:[#allocation0] sm:$0x3]  }
   0xe   :  { %17 = vrot.lane.b32.xlu0 %v16_v3, %s132_s9  ;;  %v40_v6 = vld [vmem:[#allocation0] sm:$0x3]  }
   0xf   :  { %29 = vrot.lane.b32.xlu1 %v28_v4, %s133_s10  ;;  %v46_v7 = vld [vmem:[#allocation0] sm:$0x3]  }
  0x10   :  { %v52_v8 = vld [vmem:[#allocation0] sm:$0x3]  }
  0x11   :  { %v58_v9 = vld [vmem:[#allocation0] sm:$0x3]  }
  0x12   :  { %35 = vrot.lane.b32.xlu0 %v34_v5, %s134_s11  ;;  %v64_v10 = vld [vmem:[#allocation0] sm:$0x3]  }
  0x13   :  { %41 = vrot.lane.b32.xlu1 %v40_v6, %s135_s12  ;;  %v7_v11 = vld [vmem:[#allocation0] sm:$0x3]  }
  0x14   :  { %9 = vst.msk [vmem:[%s223_s1] ss:$16 sm:$0x3] %vm8_vm0, %v7_v11   ;;  %v70_v12 = vld [vmem:[#allocation0] sm:$0x3]  }
  0x15   :  { %v76_v13 = vld [vmem:[#allocation0] sm:$0x3]  }
  0x16   :  { %47 = vrot.lane.b32.xlu0 %v46_v7, %s136_s13  ;;  %v82_v14 = vld [vmem:[#allocation0] sm:$0x3]  }
  0x17   :  { %53 = vrot.lane.b32.xlu1 %v52_v8, %s137_s14  ;;  %v88_v15 = vld [vmem:[#allocation0] sm:$0x3]  }
  0x18   :  { %v94_v16 = vld [vmem:[#allocation0] sm:$0x3]  }
  0x1a   :  { %59 = vrot.lane.b32.xlu0 %v58_v9, %s138_s17 }
  0x1b   :  { %65 = vrot.lane.b32.xlu1 %v64_v10, %s139_s18 }
  0x1e   :  { %71 = vrot.lane.b32.xlu0 %v70_v12, %s140_s19 }
  0x1f   :  { %77 = vrot.lane.b32.xlu1 %v76_v13, %s141_s20 }
  0x22   :  { %83 = vrot.lane.b32.xlu0 %v82_v14, %s142_s21 }
  0x23   :  { %89 = vrot.lane.b32.xlu1 %v88_v15, %s143_s22 }
  0x26   :  { %95 = vrot.lane.b32.xlu0 %v94_v16, %s144_s23 }
  0x7c   :  { %v12_v17 = vpop.permute.xlu0 %11  }
  0x7d   :  { %v24_v18 = vpop.permute.xlu1 %23   ;;  %100 = vst.msk [vmem:[%s223_s1 + $0x1] ss:$16 sm:$0x3] %vm8_vm0, %v12_v17  }
  0x7e   :  { %102 = vst.msk [vmem:[%s223_s1 + $0x3] ss:$16 sm:$0x3] %vm8_vm0, %v24_v18  }
  0x80   :  { %v18_v19 = vpop.permute.xlu0 %17  }
  0x81   :  { %v30_v20 = vpop.permute.xlu1 %29   ;;  %101 = vst.msk [vmem:[%s223_s1 + $0x2] ss:$16 sm:$0x3] %vm8_vm0, %v18_v19  }
  0x82   :  { %103 = vst.msk [vmem:[%s223_s1 + $0x4] ss:$16 sm:$0x3] %vm8_vm0, %v30_v20  }
  0x84   :  { %v36_v21 = vpop.permute.xlu0 %35  }
  0x85   :  { %v42_v22 = vpop.permute.xlu1 %41   ;;  %104 = vst.msk [vmem:[%s223_s1 + $0x5] ss:$16 sm:$0x3] %vm8_vm0, %v36_v21  }
  0x86   :  { %105 = vst.msk [vmem:[%s223_s1 + $0x6] ss:$16 sm:$0x3] %vm8_vm0, %v42_v22  }
  0x88   :  { %v48_v23 = vpop.permute.xlu0 %47  }
  0x89   :  { %v54_v24 = vpop.permute.xlu1 %53   ;;  %106 = vst.msk [vmem:[%s223_s1 + $0x7] ss:$16 sm:$0x3] %vm8_vm0, %v48_v23  }
  0x8a   :  { %107 = vst.msk [vmem:[%s223_s1 + $0x8] ss:$16 sm:$0x3] %vm8_vm0, %v54_v24  }
  0x8c   :  { %v60_v25 = vpop.permute.xlu0 %59  }
  0x8d   :  { %v66_v26 = vpop.permute.xlu1 %65   ;;  %108 = vst.msk [vmem:[%s223_s1 + $0x9] ss:$16 sm:$0x3] %vm8_vm0, %v60_v25  }
  0x8e   :  { %109 = vst.msk [vmem:[%s223_s1 + $0xa] ss:$16 sm:$0x3] %vm8_vm0, %v66_v26  }
  0x90   :  { %v72_v27 = vpop.permute.xlu0 %71  }
  0x91   :  { %v78_v28 = vpop.permute.xlu1 %77   ;;  %110 = vst.msk [vmem:[%s223_s1 + $0xb] ss:$16 sm:$0x3] %vm8_vm0, %v72_v27  }
  0x92   :  { %111 = vst.msk [vmem:[%s223_s1 + $0xc] ss:$16 sm:$0x3] %vm8_vm0, %v78_v28  }
  0x94   :  { %v84_v29 = vpop.permute.xlu0 %83  }
  0x95   :  { %v90_v30 = vpop.permute.xlu1 %89   ;;  %112 = vst.msk [vmem:[%s223_s1 + $0xd] ss:$16 sm:$0x3] %vm8_vm0, %v84_v29  }
  0x96   :  { %113 = vst.msk [vmem:[%s223_s1 + $0xe] ss:$16 sm:$0x3] %vm8_vm0, %v90_v30  }
  0x98   :  { %v96_v31 = vpop.permute.xlu0 %95  }
  0x99   :  { %114 = vst.msk [vmem:[%s223_s1 + $0xf] ss:$16 sm:$0x3] %vm8_vm0, %v96_v31  }

// kernel: tile.18
= control target key start
LH: loop header
LB: loop body
LE: loop exit
PB: predicated region body
PF: predicated region fallthrough
CT: control target
= control target key end

     0   :  { %s22_s0 = inlined_call_operand.vmem [shape: f32[8], index: 0, kind: input, shape index: {}]   ;;  %s23_s1 = inlined_call_operand.vmem [shape: f32[2,8], index: 1, kind: output, shape index: {}]  }
   0x1   :  { %v4_v0 = vld [vmem:[%s22_s0] ss:$0 sm:$0xff] }
   0x2   :  { %5 = vst [vmem:[%s23_s1] sm:$0x3] %v4_v0 }

// kernel: tile.1
= control target key start
LH: loop header
LB: loop body
LE: loop exit
PB: predicated region body
PF: predicated region fallthrough
CT: control target
= control target key end

     0   :  { %s67_s8 = smov 125   ;;  %vm8_vm0 = vcmask 7168   ;;  %s68_s11 = smov 126   ;;  %s118_s0 = inlined_call_operand.vmem [shape: f32[2,8], index: 0, kind: input, shape index: {}]   ;;  %s119_s1 = inlined_call_operand.vmem [shape: f32[16,1], index: 1, kind: output, shape index: {}]  }
   0x1   :  { %v5_v0 = vld [vmem:[%s118_s0] sm:$0x3]  ;;  %s66_s0 = smov 127   ;;  %s69_s12 = smov 124  }
   0x2   :  { %6 = vst [vmem:[#allocation0] sm:$0x3] %v5_v0  ;;  %s70_s13 = smov 123   ;;  %s71_s14 = smov 122  }
   0x3   :  { %s72_s15 = smov 121  }
   0x9   :  { %v10_v1 = vld [vmem:[#allocation0] sm:$0x3]  }
   0xa   :  { %v22_v2 = vld [vmem:[#allocation0] sm:$0x3]   ;;  %11 = vrot.lane.b32.xlu0 %v10_v1, %s66_s0 }
   0xb   :  { %23 = vrot.lane.b32.xlu1 %v22_v2, %s67_s8  ;;  %v16_v3 = vld [vmem:[#allocation0] sm:$0x3]  }
   0xc   :  { %v28_v4 = vld [vmem:[#allocation0] sm:$0x3]  }
   0xd   :  { %v7_v5 = vld [vmem:[#allocation0] sm:$0x3]  }
   0xe   :  { %9 = vst.msk [vmem:[%s119_s1] ss:$8 sm:$0x3] %vm8_vm0, %v7_v5   ;;  %17 = vrot.lane.b32.xlu0 %v16_v3, %s68_s11  ;;  %v34_v6 = vld [vmem:[#allocation0] sm:$0x3]  }
   0xf   :  { %29 = vrot.lane.b32.xlu1 %v28_v4, %s69_s12  ;;  %v40_v7 = vld [vmem:[#allocation0] sm:$0x3]  }
  0x10   :  { %v46_v8 = vld [vmem:[#allocation0] sm:$0x3]  }
  0x12   :  { %35 = vrot.lane.b32.xlu0 %v34_v6, %s70_s13 }
  0x13   :  { %41 = vrot.lane.b32.xlu1 %v40_v7, %s71_s14 }
  0x16   :  { %47 = vrot.lane.b32.xlu0 %v46_v8, %s72_s15 }
  0x7c   :  { %v12_v9 = vpop.permute.xlu0 %11  }
  0x7d   :  { %v24_v10 = vpop.permute.xlu1 %23   ;;  %52 = vst.msk [vmem:[%s119_s1 + $0x1] ss:$8 sm:$0x3] %vm8_vm0, %v12_v9  }
  0x7e   :  { %54 = vst.msk [vmem:[%s119_s1 + $0x3] ss:$8 sm:$0x3] %vm8_vm0, %v24_v10  }
  0x80   :  { %v18_v11 = vpop.permute.xlu0 %17  }
  0x81   :  { %v30_v12 = vpop.permute.xlu1 %29   ;;  %53 = vst.msk [vmem:[%s119_s1 + $0x2] ss:$8 sm:$0x3] %vm8_vm0, %v18_v11  }
  0x82   :  { %55 = vst.msk [vmem:[%s119_s1 + $0x4] ss:$8 sm:$0x3] %vm8_vm0, %v30_v12  }
  0x84   :  { %v36_v13 = vpop.permute.xlu0 %35  }
  0x85   :  { %v42_v14 = vpop.permute.xlu1 %41   ;;  %56 = vst.msk [vmem:[%s119_s1 + $0x5] ss:$8 sm:$0x3] %vm8_vm0, %v36_v13  }
  0x86   :  { %57 = vst.msk [vmem:[%s119_s1 + $0x6] ss:$8 sm:$0x3] %vm8_vm0, %v42_v14  }
  0x88   :  { %v48_v15 = vpop.permute.xlu0 %47  }
  0x89   :  { %58 = vst.msk [vmem:[%s119_s1 + $0x7] ss:$8 sm:$0x3] %vm8_vm0, %v48_v15  }

// kernel: umix_forward.1
= control target key start
LH: loop header
LB: loop body
LE: loop exit
PB: predicated region body
PF: predicated region fallthrough
CT: control target
= control target key end

     0   :  { %vm38_vm0 = vcmask 261120   ;;  %s3026_s0 = inlined_call_operand.vmem [shape: f32[16,32], index: 0, kind: input, shape index: {}]   ;;  %s3027_s1 = inlined_call_operand.vmem [shape: bf16[14,64,64], index: 1, kind: input, shape index: {}]   ;;  %s3028_s2 = inlined_call_operand.vmem [shape: f32[26,64], index: 2, kind: input, shape index: {}]   ;;  %s3029_s3 = inlined_call_operand.vmem [shape: f32[32,1], index: 3, kind: input, shape index: {}]   ;;  %s3030_s4 = inlined_call_operand.vmem [shape: f32[16,1], index: 4, kind: input, shape index: {}]   ;;  %s3031_s5 = inlined_call_operand.hbm [shape: f32[16,32], index: 5, kind: output, shape index: {}]  }
   0x1   :  { %v36_v0 = vld [vmem:[%s3026_s0] sm:$0xff]  ;;  %v37_v1 = vld [vmem:[%s3026_s0 + $0x8] sm:$0xff] }
   0x2   :  { %v39_v2 = vsel %vm38_vm0, %v36_v0, 0.0  ;;  %v42_v3 = vsel %vm38_vm0, %v37_v1, 0.0 }
   0x3   :  { %40 = vadd.xlane.f32.xlu0 %v39_v2 }
   0x7   :  { %43 = vadd.xlane.f32.xlu0 %v42_v3 }
   0x8   :  { %10 = vsyncpa [#allocation3], 0  ;;  %v2425_v14 = vld [vmem:[%s3027_s1 + $0x8] sm:$0xff]   ;;  %v2571_v15 = vmov 0.0   ;;  %vm2572_vm1 = vmmov 0   ;;  %v2426_v16 = vld [vmem:[%s3027_s1] sm:$0xff]  }
   0x9   :  { %2243 = vmatprep.subr.bf16.mxu0 %v2571_v15  ;;  %2247 = vmatprep.mubr.msk.bf16.mxu0 %vm2572_vm1, %v2571_v15  ;;  %v2062_v25 = vld [vmem:[%s3028_s2 + $0xc] ss:$0 sm:$0xff]  ;;  %v2063_v29 = vld [vmem:[%s3028_s2 + $0xd] ss:$0 sm:$0xff]  ;;  %v2427_v34 = vld [vmem:[%s3027_s1 + $0x38] sm:$0xff]   ;;  %vm203_vm2 = vcmask 523264  }
   0xa   :  { %2244 = vmatpush3.bf16.msra.mxu0 %v2425_v14  ;;  %2251 = vmatprep.subr.bf16.mxu1 %v2571_v15  ;;  %v2428_v35 = vld [vmem:[%s3027_s1 + $0x30] sm:$0xff]   ;;  %v2429_v36 = vld [vmem:[%s3027_s1 + $0x28] sm:$0xff]   ;;  %v2430_v37 = vld [vmem:[%s3027_s1 + $0x20] sm:$0xff]   ;;  %vm279_vm3 = vcmask 130048   ;;  %v2573_v2 = vmov 0   ;;  %vm746_vm4 = vcmask 64512  }
   0xb   :  { %2245 = vmatprep.subr.bf16.mxu0 %v2571_v15  ;;  %2259 = vmatprep.mubr.msk.bf16.mxu1 %vm2572_vm1, %v2571_v15  ;;  %v2064_v38 = vld [vmem:[%s3028_s2] ss:$0 sm:$0xff]  ;;  %v32_v3 = vld [vmem:[%s3029_s3 + $0x10] sm:$0xff]  ;;  %vm799_vm5 = vcmask 1043456   ;;  %vm1050_vm6 = vcmask 31744   ;;  %vm1103_vm7 = vcmask 1041408  }
   0xc   :  { %2252 = vmatpush3.bf16.msra.mxu1 %v2427_v34  ;;  %2424 = vset.pattern.permute.xlu1 %v2573_v2 }
   0xd   :  { %2253 = vmatprep.subr.bf16.mxu1 %v2571_v15  ;;  %2423 = vset.pattern.permute.xlu0 %v2573_v2 }
   0xe   :  { %2246 = vmatpush3.bf16.msra.mxu0 %v2426_v16 }
  0x10   :  { %2254 = vmatpush3.bf16.msra.mxu1 %v2428_v35 }
  0x11   :  { %2255 = vmatprep.subr.bf16.mxu1 %v2571_v15 }
  0x14   :  { %2256 = vmatpush3.bf16.msra.mxu1 %v2429_v36 }
  0x15   :  { %2257 = vmatprep.subr.bf16.mxu1 %v2571_v15 }
  0x18   :  { %2258 = vmatpush3.bf16.msra.mxu1 %v2430_v37 }
  0x19   :  { %2277 = vmatprep.subr.bf16.mxu1 %v2571_v15 }
  0x1d   :  { %261 = vperm.xlu0 %2423, %v32_v3  }
  0x8c   :  { %v41_v4 = vpop.xlane.xlu0 %40 }
  0x8d   :  { %v46_v5 = vmul.f32 0.03125, %v41_v4  ;;  %v30_v4 = vld [vmem:[%s3029_s3] sm:$0xff] }
  0x8f   :  { %v48_v6 = vsub.f32 %v36_v0, %v46_v5  ;;  %v2668_v0 = vld [vmem:[%s3027_s1 + $0x180] sm:$0xff]   ;;  %v31_v5 = vld [vmem:[%s3029_s3 + $0x8] sm:$0xff] }
  0x90   :  { %v44_v7 = vpop.xlane.xlu0 %43 }
  0x91   :  { %v47_v8 = vmul.f32 0.03125, %v44_v7  ;;  %v50_v9 = vmul.f32 %v48_v6, %v48_v6  ;;  %v35_v7 = vld [vmem:[%s3030_s4 + $0x8] sm:$0xff] }
  0x93   :  { %v49_v10 = vsub.f32 %v37_v1, %v47_v8  ;;  %v52_v11 = vsel %vm38_vm0, %v50_v9, 0.0  ;;  %v33_v1 = vld [vmem:[%s3029_s3 + $0x18] sm:$0xff]  ;;  %v2076_v9 = vld [vmem:[%s3028_s2 + $0x1] ss:$0 sm:$0xff] }
  0x94   :  { %53 = vadd.xlane.f32.xlu1 %v52_v11 }
  0x95   :  { %v51_v12 = vmul.f32 %v49_v10, %v49_v10 }
  0x97   :  { %v55_v13 = vsel %vm38_vm0, %v51_v12, 0.0 }
  0x98   :  { %56 = vadd.xlane.f32.xlu1 %v55_v13 }
  0xa9   :  { %266 = vperm.xlu1 %2424, %v33_v1  }
  0xad   :  { %251 = vperm.xlu1 %2424, %v30_v4  }
  0xb1   :  { %256 = vperm.xlu1 %2424, %v31_v5  }
 0x11d   :  { %v54_v17 = vpop.xlane.xlu1 %53 }
 0x11e   :  { %v58_v18 = vmul.f32 0.03125, %v54_v17  ;;  %v2696_v17 = vld [vmem:[%s3027_s1 + $0x188] sm:$0xff]  }
 0x120   :  { %v60_v19 = vadd.f32 1e-05, %v58_v18 }
 0x121   :  { %v57_v20 = vpop.xlane.xlu1 %56 }
 0x122   :  { %2446 = vrsqrt.f32 %v60_v19  ;;  %v59_v21 = vmul.f32 0.03125, %v57_v20  ;;  %v2705_v19 = vpop.permute.xlu0 %261 }
 0x124   :  { %v61_v22 = vadd.f32 1e-05, %v59_v21 }
 0x125   :  { %v2703_v18 = vpop.permute.xlu1 %266 }
 0x126   :  { %2448 = vrsqrt.f32 %v61_v22 }
 0x129   :  { %v2707_v20 = vpop.permute.xlu1 %251 }
 0x12f   :  { %v2447_v23 = vpop.eup %2446 }
 0x130   :  { %v64_v24 = vmul.f32 %v2447_v23, %v48_v6  ;;  %v34_v6 = vld [vmem:[%s3030_s4] sm:$0xff] }
 0x131   :  { %375 = vperm.xlu1 %2424, %v34_v6  }
 0x132   :  { %v71_v28 = vmul.f32 %v2062_v25, %v64_v24 }
 0x133   :  { %v2449_v26 = vpop.eup %2448 }
 0x134   :  { %v65_v27 = vmul.f32 %v2449_v26, %v49_v10  ;;  %v2636_v31 = vadd.f32 %v2063_v29, %v71_v28 }
 0x135   :  { %380 = vperm.xlu1 %2424, %v35_v7   ;;  %v2719_v7 = vld [vmem:[%s3027_s1 + $0x1a0] sm:$0xff]  }
 0x136   :  { %v72_v30 = vmul.f32 %v2062_v25, %v65_v27 }
 0x138   :  { %v2638_v32 = vadd.f32 %v2063_v29, %v72_v30  ;;  %v2712_v30 = vpop.permute.xlu1 %256 }
 0x13a   :  { %v80_v33 = vpack.c.bf16 %v2638_v32, %v2636_v31 }
 0x13c   :  { %2248 = vmatmul.mubr.msk.bf16.vlgmr.msra.gmra.mxu0 %vm38_vm0, %v80_v33 }
 0x13d   :  { %2265 = vmatprep.mubr.msk.bf16.mxu0 %vm279_vm3, %v2668_v0 }
 0x1fc   :  { %v139_v39 = vpop.f32.mrf.mxu0 }
 0x1fd   :  { %v140_v40 = vadd.f32 %v2064_v38, %v139_v39 }
 0x1fe   :  { %v2249_v41 = vpop.f32.mrf.mxu0 }
 0x1ff   :  { %v148_v42 = vmul.f32 0.044715, %v140_v40  ;;  %v146_v58 = vmul.f32 0.5, %v140_v40 }
 0x200   :  { %v142_v43 = vpop.f32.mrf.mxu0 }
 0x201   :  { %v150_v44 = vmul.f32 %v148_v42, %v140_v40  ;;  %v143_v45 = vadd.f32 %v2064_v38, %v142_v43 }
 0x202   :  { %v2250_v46 = vpop.f32.mrf.mxu0 }
 0x203   :  { %v152_v47 = vmul.f32 %v150_v44, %v140_v40  ;;  %v149_v48 = vmul.f32 0.044715, %v143_v45  ;;  %v147_v59 = vmul.f32 0.5, %v143_v45 }
 0x205   :  { %v154_v49 = vadd.f32 %v152_v47, %v140_v40  ;;  %v151_v50 = vmul.f32 %v149_v48, %v143_v45 }
 0x207   :  { %v156_v51 = vmul.f32 0.7978846, %v154_v49  ;;  %v153_v52 = vmul.f32 %v151_v50, %v143_v45 }
 0x209   :  { %2450 = vtanh.f32 %v156_v51  ;;  %v155_v53 = vadd.f32 %v153_v52, %v143_v45 }
 0x20b   :  { %v157_v54 = vmul.f32 0.7978846, %v155_v53 }
 0x20d   :  { %2452 = vtanh.f32 %v157_v54 }
 0x216   :  { %v2451_v55 = vpop.eup %2450 }
 0x217   :  { %v160_v56 = vadd.f32 1.0, %v2451_v55 }
 0x219   :  { %v162_v61 = vmul.f32 %v160_v56, %v146_v58 }
 0x21a   :  { %v2453_v57 = vpop.eup %2452 }
 0x21b   :  { %v161_v60 = vadd.f32 1.0, %v2453_v57 }
 0x21d   :  { %v163_v62 = vmul.f32 %v161_v60, %v147_v59 }
 0x21f   :  { %v164_v63 = vpack.c.bf16 %v163_v62, %v162_v61 }
 0x221   :  { %2260 = vmatmul.mubr.msk.bf16.vlgmr.msra.gmra.mxu1 %vm203_vm2, %v164_v63 }
 0x222   :  { %2279 = vmatprep.mubr.msk.bf16.mxu1 %vm2572_vm1, %v2571_v15 }
 0x2e1   :  { %v241_v8 = vpop.f32.mrf.mxu1 }
 0x2e2   :  { %v242_v12 = vadd.f32 %v2076_v9, %v241_v8  ;;  %v2726_v8 = vpop.permute.xlu1 %375 }
 0x2e3   :  { %v2261_v10 = vpop.f32.mrf.mxu1 }
 0x2e5   :  { %v244_v11 = vpop.f32.mrf.mxu1 }
 0x2e6   :  { %v245_v13 = vadd.f32 %v2076_v9, %v244_v11 }
 0x2e7   :  { %v2262_v14 = vpop.f32.mrf.mxu1 }
 0x2e8   :  { %v248_v16 = vpack.c.bf16 %v245_v13, %v242_v12  ;;  %v2730_v13 = vpop.permute.xlu1 %380 }
 0x2ea   :  { %2263 = vmatprep.subr.bf16.mxu0 %v248_v16 }
 0x2eb   :  { %2264 = vmatpush3.bf16.msra.mxu0 %v248_v16 }
 0x2ec   :  { %2269 = vmatprep.subr.bf16.mxu0 %v2571_v15 }
 0x2ee   :  { %2266 = vmatmul.mubr.msk.bf16.vlgmr.msra.gmra.mxu0 %vm279_vm3, %v2696_v17 }
 0x2ef   :  { %2273 = vmatprep.mubr.msk.bf16.mxu0 %vm2572_vm1, %v2571_v15 }
 0x3ae   :  { %v2267_v21 = vpop.f32.mrf.mxu0 }
 0x3af   :  { %v329_v22 = vadd.f32 %v2267_v21, %v2705_v19 }
 0x3b0   :  { %v320_v23 = vpop.f32.mrf.mxu0 }
 0x3b1   :  { %v341_v24 = vmul.f32 0.044715, %v329_v22  ;;  %v321_v25 = vadd.f32 %v320_v23, %v2707_v20  ;;  %v337_v56 = vmul.f32 0.5, %v329_v22 }
 0x3b2   :  { %v2268_v26 = vpop.f32.mrf.mxu0 }
 0x3b3   :  { %v345_v27 = vmul.f32 %v341_v24, %v329_v22  ;;  %v339_v28 = vmul.f32 0.044715, %v321_v25  ;;  %v332_v29 = vadd.f32 %v2268_v26, %v2703_v18  ;;  %v335_v3 = vmul.f32 0.5, %v321_v25 }
 0x3b4   :  { %v323_v33 = vpop.f32.mrf.mxu0 }
 0x3b5   :  { %v349_v34 = vmul.f32 %v345_v27, %v329_v22  ;;  %v343_v35 = vmul.f32 %v339_v28, %v321_v25  ;;  %v342_v36 = vmul.f32 0.044715, %v332_v29  ;;  %v324_v37 = vadd.f32 %v323_v33, %v2712_v30 }
 0x3b6   :  { %v338_v57 = vmul.f32 0.5, %v332_v29 }
 0x3b7   :  { %v353_v38 = vadd.f32 %v349_v34, %v329_v22  ;;  %v347_v39 = vmul.f32 %v343_v35, %v321_v25  ;;  %v346_v40 = vmul.f32 %v342_v36, %v332_v29  ;;  %v340_v41 = vmul.f32 0.044715, %v324_v37  ;;  %v2434_v36 = vld [vmem:[%s3027_s1 + $0x40] sm:$0xff]  }
 0x3b8   :  { %v336_v60 = vmul.f32 0.5, %v324_v37  ;;  %2278 = vmatpush3.bf16.msra.mxu1 %v2434_v36 }
 0x3b9   :  { %v357_v42 = vmul.f32 0.7978846, %v353_v38  ;;  %v351_v43 = vadd.f32 %v347_v39, %v321_v25  ;;  %v350_v44 = vmul.f32 %v346_v40, %v332_v29  ;;  %v344_v45 = vmul.f32 %v340_v41, %v324_v37 }
 0x3bb   :  { %2454 = vtanh.f32 %v357_v42  ;;  %v355_v46 = vmul.f32 0.7978846, %v351_v43  ;;  %v354_v47 = vadd.f32 %v350_v44, %v332_v29  ;;  %v348_v48 = vmul.f32 %v344_v45, %v324_v37  ;;  %v2088_v45 = vld [vmem:[%s3028_s2 + $0xe] ss:$0 sm:$0xff] }
 0x3bd   :  { %v358_v49 = vmul.f32 0.7978846, %v354_v47  ;;  %v352_v50 = vadd.f32 %v348_v48, %v324_v37  ;;  %2456 = vtanh.f32 %v355_v46 }
 0x3bf   :  { %2458 = vtanh.f32 %v358_v49  ;;  %v356_v51 = vmul.f32 0.7978846, %v352_v50  ;;  %v2089_v49 = vld [vmem:[%s3028_s2 + $0xf] ss:$0 sm:$0xff] }
 0x3c1   :  { %2460 = vtanh.f32 %v356_v51 }
 0x3c8   :  { %v2455_v52 = vpop.eup %2454 }
 0x3c9   :  { %v365_v54 = vadd.f32 1.0, %v2455_v52 }
 0x3ca   :  { %v2457_v53 = vpop.eup %2456 }
 0x3cb   :  { %v369_v61 = vmul.f32 %v365_v54, %v337_v56  ;;  %v363_v63 = vadd.f32 1.0, %v2457_v53  ;;  %v2435_v54 = vld [vmem:[%s3027_s1 + $0x68] sm:$0xff]   ;;  %v2092_v56 = vld [vmem:[%s3028_s2 + $0x2] ss:$0 sm:$0xff] }
 0x3cc   :  { %v2459_v55 = vpop.eup %2458 }
 0x3cd   :  { %v366_v58 = vadd.f32 1.0, %v2459_v55  ;;  %v367_v5 = vmul.f32 %v363_v63, %v335_v3  ;;  %v2436_v55 = vld [vmem:[%s3027_s1 + $0x60] sm:$0xff]  }
 0x3ce   :  { %v2461_v59 = vpop.eup %2460 }
 0x3cf   :  { %v370_v62 = vmul.f32 %v366_v58, %v338_v57  ;;  %v364_v1 = vadd.f32 1.0, %v2461_v59 }
 0x3d1   :  { %v372_v2 = vpack.c.bf16 %v370_v62, %v369_v61  ;;  %v368_v4 = vmul.f32 %v364_v1, %v336_v60 }
 0x3d3   :  { %2270 = vmatpush3.bf16.msra.mxu0 %v372_v2  ;;  %v371_v6 = vpack.c.bf16 %v368_v4, %v367_v5 }
 0x3d4   :  { %2271 = vmatprep.subr.bf16.mxu0 %v2571_v15 }
 0x3d7   :  { %2272 = vmatpush3.bf16.msra.mxu0 %v371_v6 }
 0x3d8   :  { %2283 = vmatprep.subr.bf16.mxu0 %v2571_v15 }
 0x3da   :  { %2274 = vmatmul.mubr.msk.bf16.vlgmr.msra.gmra.mxu0 %vm38_vm0, %v2719_v7 }
 0x3db   :  { %2287 = vmatprep.mubr.msk.bf16.mxu0 %vm2572_vm1, %v2571_v15  ;;  %2284 = vmatpush3.bf16.msra.mxu0 %v2435_v54 }
 0x3dc   :  { %2285 = vmatprep.subr.bf16.mxu0 %v2571_v15 }
 0x3df   :  { %2286 = vmatpush3.bf16.msra.mxu0 %v2436_v55 }
 0x3e0   :  { %2297 = vmatprep.subr.bf16.mxu0 %v2571_v15 }
 0x49a   :  { %v425_v9 = vpop.f32.mrf.mxu0 }
 0x49b   :  { %v426_v10 = vadd.f32 %v425_v9, %v2726_v8 }
 0x49c   :  { %v2275_v11 = vpop.f32.mrf.mxu0 }
 0x49d   :  { %v432_v12 = vsel %vm279_vm3, %v426_v10, 0.0 }
 0x49e   :  { %433 = vadd.xlane.f32.xlu1 %v432_v12  ;;  %v428_v14 = vpop.f32.mrf.mxu0 }
 0x49f   :  { %v429_v16 = vadd.f32 %v428_v14, %v2730_v13 }
 0x4a0   :  { %v2276_v21 = vpop.f32.mrf.mxu0 }
 0x4a1   :  { %v435_v22 = vsel %vm279_vm3, %v429_v16, 0.0 }
 0x4a2   :  { %436 = vadd.xlane.f32.xlu0 %v435_v22 }
 0x527   :  { %v434_v23 = vpop.xlane.xlu1 %433 }
 0x528   :  { %v439_v24 = vmul.f32 0.0625, %v434_v23 }
 0x52a   :  { %v441_v25 = vsub.f32 %v426_v10, %v439_v24 }
 0x52b   :  { %v437_v26 = vpop.xlane.xlu0 %436 }
 0x52c   :  { %v440_v27 = vmul.f32 0.0625, %v437_v26  ;;  %v443_v28 = vmul.f32 %v441_v25, %v441_v25 }
 0x52e   :  { %v442_v29 = vsub.f32 %v429_v16, %v440_v27  ;;  %v445_v33 = vsel %vm279_vm3, %v443_v28, 0.0  ;;  %v2099_v28 = vld [vmem:[%s3028_s2 + $0x3] ss:$0 sm:$0xff] }
 0x52f   :  { %446 = vadd.xlane.f32.xlu1 %v445_v33 }
 0x530   :  { %v444_v34 = vmul.f32 %v442_v29, %v442_v29 }
 0x532   :  { %v448_v35 = vsel %vm279_vm3, %v444_v34, 0.0 }
 0x533   :  { %449 = vadd.xlane.f32.xlu1 %v448_v35 }
 0x5b8   :  { %v447_v37 = vpop.xlane.xlu1 %446 }
 0x5b9   :  { %v451_v38 = vmul.f32 0.0625, %v447_v37 }
 0x5bb   :  { %v453_v39 = vadd.f32 1e-05, %v451_v38 }
 0x5bc   :  { %v450_v40 = vpop.xlane.xlu1 %449 }
 0x5bd   :  { %2462 = vrsqrt.f32 %v453_v39  ;;  %v452_v41 = vmul.f32 0.0625, %v450_v40 }
 0x5bf   :  { %v454_v42 = vadd.f32 1e-05, %v452_v41 }
 0x5c1   :  { %2464 = vrsqrt.f32 %v454_v42 }
 0x5ca   :  { %v2463_v43 = vpop.eup %2462 }
 0x5cb   :  { %v457_v44 = vmul.f32 %v2463_v43, %v441_v25 }
 0x5cd   :  { %v464_v48 = vmul.f32 %v2088_v45, %v457_v44 }
 0x5ce   :  { %v2465_v46 = vpop.eup %2464 }
 0x5cf   :  { %v458_v47 = vmul.f32 %v2465_v46, %v442_v29  ;;  %v2745_v51 = vadd.f32 %v2089_v49, %v464_v48 }
 0x5d1   :  { %v465_v50 = vmul.f32 %v2088_v45, %v458_v47 }
 0x5d3   :  { %v2747_v52 = vadd.f32 %v2089_v49, %v465_v50 }
 0x5d5   :  { %v473_v53 = vpack.c.bf16 %v2747_v52, %v2745_v51 }
 0x5d7   :  { %2280 = vmatmul.mubr.msk.bf16.vlgmr.msra.gmra.mxu1 %vm279_vm3, %v473_v53 }
 0x5d8   :  { %2293 = vmatprep.mubr.msk.bf16.mxu1 %vm279_vm3, %v2668_v0 }
 0x697   :  { %v525_v57 = vpop.f32.mrf.mxu1 }
 0x698   :  { %v526_v58 = vadd.f32 %v2092_v56, %v525_v57 }
 0x699   :  { %v2281_v59 = vpop.f32.mrf.mxu1 }
 0x69a   :  { %v534_v60 = vmul.f32 0.044715, %v526_v58  ;;  %v532_v21 = vmul.f32 0.5, %v526_v58 }
 0x69b   :  { %v528_v61 = vpop.f32.mrf.mxu1 }
 0x69c   :  { %v536_v62 = vmul.f32 %v534_v60, %v526_v58  ;;  %v529_v63 = vadd.f32 %v2092_v56, %v528_v61 }
 0x69d   :  { %v2282_v1 = vpop.f32.mrf.mxu1 }
 0x69e   :  { %v538_v2 = vmul.f32 %v536_v62, %v526_v58  ;;  %v535_v3 = vmul.f32 0.044715, %v529_v63  ;;  %v533_v22 = vmul.f32 0.5, %v529_v63 }
 0x6a0   :  { %v540_v4 = vadd.f32 %v538_v2, %v526_v58  ;;  %v537_v5 = vmul.f32 %v535_v3, %v529_v63 }
 0x6a2   :  { %v542_v6 = vmul.f32 0.7978846, %v540_v4  ;;  %v539_v9 = vmul.f32 %v537_v5, %v529_v63 }
 0x6a4   :  { %2466 = vtanh.f32 %v542_v6  ;;  %v541_v10 = vadd.f32 %v539_v9, %v529_v63 }
 0x6a6   :  { %v543_v11 = vmul.f32 0.7978846, %v541_v10 }
 0x6a8   :  { %2468 = vtanh.f32 %v543_v11 }
 0x6b1   :  { %v2467_v12 = vpop.eup %2466 }
 0x6b2   :  { %v546_v14 = vadd.f32 1.0, %v2467_v12 }
 0x6b4   :  { %v548_v24 = vmul.f32 %v546_v14, %v532_v21 }
 0x6b5   :  { %v2469_v16 = vpop.eup %2468 }
 0x6b6   :  { %v547_v23 = vadd.f32 1.0, %v2469_v16 }
 0x6b8   :  { %v549_v25 = vmul.f32 %v547_v23, %v533_v22 }
 0x6ba   :  { %v550_v26 = vpack.c.bf16 %v549_v25, %v548_v24 }
 0x6bc   :  { %2288 = vmatmul.mubr.msk.bf16.vlgmr.msra.gmra.mxu0 %vm38_vm0, %v550_v26 }
 0x6bd   :  { %2301 = vmatprep.mubr.msk.bf16.mxu0 %vm2572_vm1, %v2571_v15 }
 0x77c   :  { %v610_v27 = vpop.f32.mrf.mxu0 }
 0x77d   :  { %v611_v34 = vadd.f32 %v2099_v28, %v610_v27 }
 0x77e   :  { %v2289_v29 = vpop.f32.mrf.mxu0 }
 0x780   :  { %v613_v33 = vpop.f32.mrf.mxu0 }
 0x781   :  { %v614_v35 = vadd.f32 %v2099_v28, %v613_v33 }
 0x782   :  { %v2290_v36 = vpop.f32.mrf.mxu0 }
 0x783   :  { %v617_v37 = vpack.c.bf16 %v614_v35, %v611_v34 }
 0x785   :  { %2291 = vmatprep.subr.bf16.mxu1 %v617_v37 }
 0x786   :  { %2292 = vmatpush3.bf16.msra.mxu1 %v617_v37 }
 0x787   :  { %2305 = vmatprep.subr.bf16.mxu1 %v2571_v15 }
 0x789   :  { %2294 = vmatmul.mubr.msk.bf16.vlgmr.msra.gmra.mxu1 %vm279_vm3, %v2696_v17 }
 0x78a   :  { %2307 = vmatprep.mubr.msk.bf16.mxu1 %vm2572_vm1, %v2571_v15 }
 0x849   :  { %v2295_v38 = vpop.f32.mrf.mxu1 }
 0x84a   :  { %v661_v39 = vadd.f32 %v2295_v38, %v2705_v19 }
 0x84b   :  { %v652_v40 = vpop.f32.mrf.mxu1 }
 0x84c   :  { %v673_v41 = vmul.f32 0.044715, %v661_v39  ;;  %v653_v42 = vadd.f32 %v652_v40, %v2707_v20  ;;  %v669_v11 = vmul.f32 0.5, %v661_v39 }
 0x84d   :  { %v2296_v43 = vpop.f32.mrf.mxu1 }
 0x84e   :  { %v677_v44 = vmul.f32 %v673_v41, %v661_v39  ;;  %v671_v45 = vmul.f32 0.044715, %v653_v42  ;;  %v664_v46 = vadd.f32 %v2296_v43, %v2703_v18  ;;  %v667_v27 = vmul.f32 0.5, %v653_v42 }
 0x84f   :  { %v655_v47 = vpop.f32.mrf.mxu1 }
 0x850   :  { %v681_v48 = vmul.f32 %v677_v44, %v661_v39  ;;  %v675_v49 = vmul.f32 %v671_v45, %v653_v42  ;;  %v674_v50 = vmul.f32 0.044715, %v664_v46  ;;  %v656_v53 = vadd.f32 %v655_v47, %v2712_v30 }
 0x851   :  { %v670_v12 = vmul.f32 0.5, %v664_v46 }
 0x852   :  { %v685_v54 = vadd.f32 %v681_v48, %v661_v39  ;;  %v679_v55 = vmul.f32 %v675_v49, %v653_v42  ;;  %v678_v56 = vmul.f32 %v674_v50, %v664_v46  ;;  %v672_v57 = vmul.f32 0.044715, %v656_v53 }
 0x853   :  { %v668_v21 = vmul.f32 0.5, %v656_v53 }
 0x854   :  { %v689_v58 = vmul.f32 0.7978846, %v685_v54  ;;  %v683_v59 = vadd.f32 %v679_v55, %v653_v42  ;;  %v682_v60 = vmul.f32 %v678_v56, %v664_v46  ;;  %v676_v61 = vmul.f32 %v672_v57, %v656_v53  ;;  %v2108_v54 = vld [vmem:[%s3027_s1 + $0x80] sm:$0xf] }
 0x855   :  { %v801_v55 = vsel %vm799_vm5, %v2108_v54, 0 }
 0x856   :  { %2470 = vtanh.f32 %v689_v58  ;;  %v687_v62 = vmul.f32 0.7978846, %v683_v59  ;;  %v686_v63 = vadd.f32 %v682_v60, %v664_v46  ;;  %v680_v1 = vmul.f32 %v676_v61, %v656_v53  ;;  %2306 = vmatpush3.bf16.msra.mxu1 %v801_v55 }
 0x858   :  { %v690_v2 = vmul.f32 0.7978846, %v686_v63  ;;  %v684_v3 = vadd.f32 %v680_v1, %v656_v53  ;;  %2472 = vtanh.f32 %v687_v62  ;;  %v2106_v1 = vld [vmem:[%s3028_s2 + $0x10] ss:$0 sm:$0xff] }
 0x85a   :  { %2474 = vtanh.f32 %v690_v2  ;;  %v688_v4 = vmul.f32 0.7978846, %v684_v3 }
 0x85c   :  { %2476 = vtanh.f32 %v688_v4 }
 0x863   :  { %v2471_v5 = vpop.eup %2470 }
 0x864   :  { %v697_v9 = vadd.f32 1.0, %v2471_v5  ;;  %v2107_v5 = vld [vmem:[%s3028_s2 + $0x11] ss:$0 sm:$0xff] }
 0x865   :  { %v2473_v6 = vpop.eup %2472 }
 0x866   :  { %v701_v22 = vmul.f32 %v697_v9, %v669_v11  ;;  %v695_v24 = vadd.f32 1.0, %v2473_v6 }
 0x867   :  { %v2475_v10 = vpop.eup %2474 }
 0x868   :  { %v698_v14 = vadd.f32 1.0, %v2475_v10  ;;  %v699_v29 = vmul.f32 %v695_v24, %v667_v27 }
 0x869   :  { %v2477_v16 = vpop.eup %2476 }
 0x86a   :  { %v702_v23 = vmul.f32 %v698_v14, %v670_v12  ;;  %v696_v25 = vadd.f32 1.0, %v2477_v16  ;;  %v2437_v12 = vld [vmem:[%s3027_s1 + $0xa0] sm:$0xff]  }
 0x86b   :  { %v2109_v14 = vld [vmem:[%s3028_s2 + $0x4] ss:$0 sm:$0xff] }
 0x86c   :  { %v704_v26 = vpack.c.bf16 %v702_v23, %v701_v22  ;;  %v700_v28 = vmul.f32 %v696_v25, %v668_v21 }
 0x86e   :  { %2298 = vmatpush3.bf16.msra.mxu0 %v704_v26  ;;  %v703_v33 = vpack.c.bf16 %v700_v28, %v699_v29 }
 0x86f   :  { %2299 = vmatprep.subr.bf16.mxu0 %v2571_v15 }
 0x872   :  { %2300 = vmatpush3.bf16.msra.mxu0 %v703_v33 }
 0x873   :  { %2311 = vmatprep.subr.bf16.mxu0 %v2571_v15 }
 0x875   :  { %2302 = vmatmul.mubr.msk.bf16.vlgmr.msra.gmra.mxu0 %vm38_vm0, %v2719_v7 }
 0x876   :  { %2313 = vmatprep.mubr.msk.bf16.mxu0 %vm2572_vm1, %v2571_v15  ;;  %2312 = vmatpush3.bf16.msra.mxu0 %v2437_v12 }
 0x877   :  { %2323 = vmatprep.subr.bf16.mxu0 %v2571_v15 }
 0x935   :  { %v739_v34 = vpop.f32.mrf.mxu0 }
 0x936   :  { %v740_v35 = vadd.f32 %v739_v34, %v2726_v8 }
 0x937   :  { %v2303_v36 = vpop.f32.mrf.mxu0 }
 0x938   :  { %v747_v37 = vsel %vm746_vm4, %v740_v35, 0.0 }
 0x939   :  { %748 = vadd.xlane.f32.xlu0 %v747_v37  ;;  %v742_v38 = vpop.f32.mrf.mxu0 }
 0x93a   :  { %v743_v39 = vadd.f32 %v742_v38, %v2730_v13 }
 0x93b   :  { %v2304_v40 = vpop.f32.mrf.mxu0 }
 0x93c   :  { %v750_v41 = vsel %vm746_vm4, %v743_v39, 0.0 }
 0x93d   :  { %751 = vadd.xlane.f32.xlu1 %v750_v41 }
 0x9c2   :  { %v749_v42 = vpop.xlane.xlu0 %748 }
 0x9c3   :  { %v754_v43 = vmul.f32 0.125, %v749_v42 }
 0x9c5   :  { %v756_v44 = vsub.f32 %v740_v35, %v754_v43 }
 0x9c6   :  { %v752_v45 = vpop.xlane.xlu1 %751 }
 0x9c7   :  { %v755_v46 = vmul.f32 0.125, %v752_v45  ;;  %v758_v47 = vmul.f32 %v756_v44, %v756_v44 }
 0x9c9   :  { %v757_v48 = vsub.f32 %v743_v39, %v755_v46  ;;  %v760_v49 = vsel %vm746_vm4, %v758_v47, 0.0 }
 0x9ca   :  { %761 = vadd.xlane.f32.xlu0 %v760_v49  ;;  %v2113_v49 = vld [vmem:[%s3028_s2 + $0x5] ss:$0 sm:$0xff] }
 0x9cb   :  { %v759_v50 = vmul.f32 %v757_v48, %v757_v48 }
 0x9cd   :  { %v763_v53 = vsel %vm746_vm4, %v759_v50, 0.0 }
 0x9ce   :  { %764 = vadd.xlane.f32.xlu1 %v763_v53 }
 0xa53   :  { %v762_v56 = vpop.xlane.xlu0 %761 }
 0xa54   :  { %v766_v57 = vmul.f32 0.125, %v762_v56 }
 0xa56   :  { %v768_v58 = vadd.f32 1e-05, %v766_v57 }
 0xa57   :  { %v765_v59 = vpop.xlane.xlu1 %764 }
 0xa58   :  { %2478 = vrsqrt.f32 %v768_v58  ;;  %v767_v60 = vmul.f32 0.125, %v765_v59 }
 0xa5a   :  { %v769_v61 = vadd.f32 1e-05, %v767_v60 }
 0xa5c   :  { %2480 = vrsqrt.f32 %v769_v61 }
 0xa65   :  { %v2479_v62 = vpop.eup %2478 }
 0xa66   :  { %v772_v63 = vmul.f32 %v2479_v62, %v756_v44 }
 0xa68   :  { %v779_v4 = vmul.f32 %v2106_v1, %v772_v63 }
 0xa69   :  { %v2481_v2 = vpop.eup %2480 }
 0xa6a   :  { %v773_v3 = vmul.f32 %v2481_v2, %v757_v48  ;;  %v2802_v9 = vadd.f32 %v2107_v5, %v779_v4 }
 0xa6c   :  { %v780_v6 = vmul.f32 %v2106_v1, %v773_v3 }
 0xa6e   :  { %v2804_v10 = vadd.f32 %v2107_v5, %v780_v6 }
 0xa70   :  { %v788_v11 = vpack.c.bf16 %v2804_v10, %v2802_v9 }
 0xa72   :  { %2308 = vmatmul.mubr.msk.bf16.vlgmr.msra.gmra.mxu1 %vm746_vm4, %v788_v11 }
 0xa73   :  { %2319 = vmatprep.mubr.msk.bf16.mxu1 %vm279_vm3, %v2668_v0 }
 0xb32   :  { %v837_v16 = vpop.f32.mrf.mxu1 }
 0xb33   :  { %v838_v21 = vadd.f32 %v2109_v14, %v837_v16 }
 0xb34   :  { %v2309_v22 = vpop.f32.mrf.mxu1 }
 0xb35   :  { %v846_v23 = vmul.f32 0.044715, %v838_v21  ;;  %v844_v42 = vmul.f32 0.5, %v838_v21 }
 0xb36   :  { %v840_v24 = vpop.f32.mrf.mxu1 }
 0xb37   :  { %v848_v25 = vmul.f32 %v846_v23, %v838_v21  ;;  %v841_v26 = vadd.f32 %v2109_v14, %v840_v24 }
 0xb38   :  { %v2310_v27 = vpop.f32.mrf.mxu1 }
 0xb39   :  { %v850_v28 = vmul.f32 %v848_v25, %v838_v21  ;;  %v847_v29 = vmul.f32 0.044715, %v841_v26  ;;  %v845_v43 = vmul.f32 0.5, %v841_v26 }
 0xb3b   :  { %v852_v33 = vadd.f32 %v850_v28, %v838_v21  ;;  %v849_v34 = vmul.f32 %v847_v29, %v841_v26 }
 0xb3d   :  { %v854_v35 = vmul.f32 0.7978846, %v852_v33  ;;  %v851_v36 = vmul.f32 %v849_v34, %v841_v26 }
 0xb3f   :  { %2482 = vtanh.f32 %v854_v35  ;;  %v853_v37 = vadd.f32 %v851_v36, %v841_v26 }
 0xb41   :  { %v855_v38 = vmul.f32 0.7978846, %v853_v37 }
 0xb43   :  { %2484 = vtanh.f32 %v855_v38 }
 0xb4c   :  { %v2483_v39 = vpop.eup %2482 }
 0xb4d   :  { %v858_v40 = vadd.f32 1.0, %v2483_v39 }
 0xb4f   :  { %v860_v45 = vmul.f32 %v858_v40, %v844_v42 }
 0xb50   :  { %v2485_v41 = vpop.eup %2484 }
 0xb51   :  { %v859_v44 = vadd.f32 1.0, %v2485_v41 }
 0xb53   :  { %v861_v46 = vmul.f32 %v859_v44, %v845_v43 }
 0xb55   :  { %v862_v47 = vpack.c.bf16 %v861_v46, %v860_v45 }
 0xb57   :  { %2314 = vmatmul.mubr.msk.bf16.vlgmr.msra.gmra.mxu0 %vm279_vm3, %v862_v47 }
 0xb58   :  { %2327 = vmatprep.mubr.msk.bf16.mxu0 %vm2572_vm1, %v2571_v15 }
 0xc17   :  { %v914_v48 = vpop.f32.mrf.mxu0 }
 0xc18   :  { %v915_v54 = vadd.f32 %v2113_v49, %v914_v48 }
 0xc19   :  { %v2315_v50 = vpop.f32.mrf.mxu0 }
 0xc1b   :  { %v917_v53 = vpop.f32.mrf.mxu0 }
 0xc1c   :  { %v918_v55 = vadd.f32 %v2113_v49, %v917_v53 }
 0xc1d   :  { %v2316_v56 = vpop.f32.mrf.mxu0 }
 0xc1e   :  { %v921_v57 = vpack.c.bf16 %v918_v55, %v915_v54 }
 0xc20   :  { %2317 = vmatprep.subr.bf16.mxu1 %v921_v57 }
 0xc21   :  { %2318 = vmatpush3.bf16.msra.mxu1 %v921_v57 }
 0xc22   :  { %2331 = vmatprep.subr.bf16.mxu1 %v2571_v15 }
 0xc24   :  { %2320 = vmatmul.mubr.msk.bf16.vlgmr.msra.gmra.mxu1 %vm279_vm3, %v2696_v17 }
 0xc25   :  { %2333 = vmatprep.mubr.msk.bf16.mxu1 %vm2572_vm1, %v2571_v15 }
 0xce4   :  { %v2321_v58 = vpop.f32.mrf.mxu1 }
 0xce5   :  { %v965_v59 = vadd.f32 %v2321_v58, %v2705_v19 }
 0xce6   :  { %v956_v60 = vpop.f32.mrf.mxu1 }
 0xce7   :  { %v977_v61 = vmul.f32 0.044715, %v965_v59  ;;  %v957_v62 = vadd.f32 %v956_v60, %v2707_v20  ;;  %v973_v40 = vmul.f32 0.5, %v965_v59 }
 0xce8   :  { %v2322_v63 = vpop.f32.mrf.mxu1 }
 0xce9   :  { %v981_v1 = vmul.f32 %v977_v61, %v965_v59  ;;  %v975_v2 = vmul.f32 0.044715, %v957_v62  ;;  %v968_v3 = vadd.f32 %v2322_v63, %v2703_v18  ;;  %v971_v50 = vmul.f32 0.5, %v957_v62 }
 0xcea   :  { %v959_v4 = vpop.f32.mrf.mxu1 }
 0xceb   :  { %v985_v5 = vmul.f32 %v981_v1, %v965_v59  ;;  %v979_v6 = vmul.f32 %v975_v2, %v957_v62  ;;  %v978_v11 = vmul.f32 0.044715, %v968_v3  ;;  %v960_v12 = vadd.f32 %v959_v4, %v2712_v30 }
 0xcec   :  { %v974_v41 = vmul.f32 0.5, %v968_v3 }
 0xced   :  { %v989_v14 = vadd.f32 %v985_v5, %v965_v59  ;;  %v983_v16 = vmul.f32 %v979_v6, %v957_v62  ;;  %v982_v21 = vmul.f32 %v978_v11, %v968_v3  ;;  %v976_v22 = vmul.f32 0.044715, %v960_v12 }
 0xcee   :  { %v972_v44 = vmul.f32 0.5, %v960_v12 }
 0xcef   :  { %v993_v23 = vmul.f32 0.7978846, %v989_v14  ;;  %v987_v24 = vadd.f32 %v983_v16, %v957_v62  ;;  %v986_v25 = vmul.f32 %v982_v21, %v968_v3  ;;  %v980_v26 = vmul.f32 %v976_v22, %v960_v12  ;;  %v2121_v21 = vld [vmem:[%s3027_s1 + $0xc0] sm:$0x3] }
 0xcf0   :  { %v1105_v22 = vsel %vm1103_vm7, %v2121_v21, 0 }
 0xcf1   :  { %2486 = vtanh.f32 %v993_v23  ;;  %v991_v27 = vmul.f32 0.7978846, %v987_v24  ;;  %v990_v28 = vadd.f32 %v986_v25, %v968_v3  ;;  %v984_v29 = vmul.f32 %v980_v26, %v960_v12  ;;  %2332 = vmatpush3.bf16.msra.mxu1 %v1105_v22 }
 0xcf3   :  { %v994_v33 = vmul.f32 0.7978846, %v990_v28  ;;  %v988_v34 = vadd.f32 %v984_v29, %v960_v12  ;;  %2488 = vtanh.f32 %v991_v27 }
 0xcf5   :  { %2490 = vtanh.f32 %v994_v33  ;;  %v992_v35 = vmul.f32 0.7978846, %v988_v34  ;;  %v2119_v34 = vld [vmem:[%s3028_s2 + $0x12] ss:$0 sm:$0xff] }
 0xcf7   :  { %2492 = vtanh.f32 %v992_v35 }
 0xcfe   :  { %v2487_v36 = vpop.eup %2486 }
 0xcff   :  { %v1001_v38 = vadd.f32 1.0, %v2487_v36 }
 0xd00   :  { %v2489_v37 = vpop.eup %2488 }
 0xd01   :  { %v1005_v45 = vmul.f32 %v1001_v38, %v973_v40  ;;  %v999_v47 = vadd.f32 1.0, %v2489_v37  ;;  %v2120_v38 = vld [vmem:[%s3028_s2 + $0x13] ss:$0 sm:$0xff] }
 0xd02   :  { %v2491_v39 = vpop.eup %2490 }
 0xd03   :  { %v1002_v42 = vadd.f32 1.0, %v2491_v39  ;;  %v1003_v54 = vmul.f32 %v999_v47, %v971_v50 }
 0xd04   :  { %v2493_v43 = vpop.eup %2492 }
 0xd05   :  { %v1006_v46 = vmul.f32 %v1002_v42, %v974_v41  ;;  %v1000_v48 = vadd.f32 1.0, %v2493_v43  ;;  %v2438_v43 = vld [vmem:[%s3027_s1 + $0xe0] sm:$0xff]  }
 0xd07   :  { %v1008_v49 = vpack.c.bf16 %v1006_v46, %v1005_v45  ;;  %v1004_v53 = vmul.f32 %v1000_v48, %v972_v44  ;;  %v2122_v44 = vld [vmem:[%s3028_s2 + $0x6] ss:$0 sm:$0xff] }
 0xd09   :  { %2324 = vmatpush3.bf16.msra.mxu0 %v1008_v49  ;;  %v1007_v55 = vpack.c.bf16 %v1004_v53, %v1003_v54 }
 0xd0a   :  { %2325 = vmatprep.subr.bf16.mxu0 %v2571_v15 }
 0xd0d   :  { %2326 = vmatpush3.bf16.msra.mxu0 %v1007_v55 }
 0xd0e   :  { %2337 = vmatprep.subr.bf16.mxu0 %v2571_v15 }
 0xd10   :  { %2328 = vmatmul.mubr.msk.bf16.vlgmr.msra.gmra.mxu0 %vm38_vm0, %v2719_v7 }
 0xd11   :  { %2339 = vmatprep.mubr.msk.bf16.mxu0 %vm2572_vm1, %v2571_v15  ;;  %2338 = vmatpush3.bf16.msra.mxu0 %v2438_v43 }
 0xd12   :  { %2349 = vmatprep.subr.bf16.mxu0 %v2571_v15 }
 0xdd0   :  { %v1043_v56 = vpop.f32.mrf.mxu0 }
 0xdd1   :  { %v1044_v57 = vadd.f32 %v1043_v56, %v2726_v8 }
 0xdd2   :  { %v2329_v58 = vpop.f32.mrf.mxu0 }
 0xdd3   :  { %v1051_v59 = vsel %vm1050_vm6, %v1044_v57, 0.0 }
 0xdd4   :  { %1052 = vadd.xlane.f32.xlu0 %v1051_v59  ;;  %v1046_v60 = vpop.f32.mrf.mxu0 }
 0xdd5   :  { %v1047_v61 = vadd.f32 %v1046_v60, %v2730_v13 }
 0xdd6   :  { %v2330_v62 = vpop.f32.mrf.mxu0 }
 0xdd7   :  { %v1054_v63 = vsel %vm1050_vm6, %v1047_v61, 0.0 }
 0xdd8   :  { %1055 = vadd.xlane.f32.xlu1 %v1054_v63 }
 0xe5d   :  { %v1053_v1 = vpop.xlane.xlu0 %1052 }
 0xe5e   :  { %v1058_v2 = vmul.f32 0.25, %v1053_v1 }
 0xe60   :  { %v1060_v3 = vsub.f32 %v1044_v57, %v1058_v2 }
 0xe61   :  { %v1056_v4 = vpop.xlane.xlu1 %1055 }
 0xe62   :  { %v1059_v5 = vmul.f32 0.25, %v1056_v4  ;;  %v1062_v6 = vmul.f32 %v1060_v3, %v1060_v3 }
 0xe64   :  { %v1061_v11 = vsub.f32 %v1047_v61, %v1059_v5  ;;  %v1064_v12 = vsel %vm1050_vm6, %v1062_v6, 0.0 }
 0xe65   :  { %1065 = vadd.xlane.f32.xlu0 %v1064_v12  ;;  %v2126_v12 = vld [vmem:[%s3028_s2 + $0x7] ss:$0 sm:$0xff] }
 0xe66   :  { %v1063_v14 = vmul.f32 %v1061_v11, %v1061_v11 }
 0xe68   :  { %v1067_v16 = vsel %vm1050_vm6, %v1063_v14, 0.0 }
 0xe69   :  { %1068 = vadd.xlane.f32.xlu1 %v1067_v16 }
 0xeee   :  { %v1066_v23 = vpop.xlane.xlu0 %1065 }
 0xeef   :  { %v1070_v24 = vmul.f32 0.25, %v1066_v23 }
 0xef1   :  { %v1072_v25 = vadd.f32 1e-05, %v1070_v24 }
 0xef2   :  { %v1069_v26 = vpop.xlane.xlu1 %1068 }
 0xef3   :  { %2494 = vrsqrt.f32 %v1072_v25  ;;  %v1071_v27 = vmul.f32 0.25, %v1069_v26 }
 0xef5   :  { %v1073_v28 = vadd.f32 1e-05, %v1071_v27 }
 0xef7   :  { %2496 = vrsqrt.f32 %v1073_v28 }
 0xf00   :  { %v2495_v29 = vpop.eup %2494 }
 0xf01   :  { %v1076_v33 = vmul.f32 %v2495_v29, %v1060_v3 }
 0xf03   :  { %v1083_v37 = vmul.f32 %v2119_v34, %v1076_v33 }
 0xf04   :  { %v2497_v35 = vpop.eup %2496 }
 0xf05   :  { %v1077_v36 = vmul.f32 %v2497_v35, %v1061_v11  ;;  %v1090_v40 = vadd.f32 %v2120_v38, %v1083_v37 }
 0xf07   :  { %v1084_v39 = vmul.f32 %v2119_v34, %v1077_v36 }
 0xf09   :  { %v1091_v41 = vadd.f32 %v2120_v38, %v1084_v39 }
 0xf0b   :  { %v1092_v42 = vpack.c.bf16 %v1091_v41, %v1090_v40 }
 0xf0d   :  { %2334 = vmatmul.mubr.msk.bf16.vlgmr.msra.gmra.mxu1 %vm1050_vm6, %v1092_v42 }
 0xf0e   :  { %2345 = vmatprep.mubr.msk.bf16.mxu1 %vm279_vm3, %v2668_v0 }
 0xfcd   :  { %v1141_v45 = vpop.f32.mrf.mxu1 }
 0xfce   :  { %v1142_v46 = vadd.f32 %v2122_v44, %v1141_v45 }
 0xfcf   :  { %v2335_v47 = vpop.f32.mrf.mxu1 }
 0xfd0   :  { %v1150_v48 = vmul.f32 0.044715, %v1142_v46  ;;  %v1148_v2 = vmul.f32 0.5, %v1142_v46 }
 0xfd1   :  { %v1144_v49 = vpop.f32.mrf.mxu1 }
 0xfd2   :  { %v1152_v50 = vmul.f32 %v1150_v48, %v1142_v46  ;;  %v1145_v53 = vadd.f32 %v2122_v44, %v1144_v49  ;;  %v2129_v48 = vld [vmem:[%s3028_s2 + $0x14] ss:$0 sm:$0xff] }
 0xfd3   :  { %v2336_v54 = vpop.f32.mrf.mxu1 }
 0xfd4   :  { %v1154_v0 = vmul.f32 %v1152_v50, %v1142_v46  ;;  %v1151_v55 = vmul.f32 0.044715, %v1145_v53  ;;  %v1149_v3 = vmul.f32 0.5, %v1145_v53  ;;  %v2130_v54 = vld [vmem:[%s3028_s2 + $0x15] ss:$0 sm:$0xff] }
 0xfd6   :  { %v1156_v56 = vadd.f32 %v1154_v0, %v1142_v46  ;;  %v1153_v57 = vmul.f32 %v1151_v55, %v1145_v53 }
 0xfd8   :  { %v1158_v58 = vmul.f32 0.7978846, %v1156_v56  ;;  %v1155_v59 = vmul.f32 %v1153_v57, %v1145_v53 }
 0xfda   :  { %2498 = vtanh.f32 %v1158_v58  ;;  %v1157_v60 = vadd.f32 %v1155_v59, %v1145_v53 }
 0xfdc   :  { %v1159_v61 = vmul.f32 0.7978846, %v1157_v60 }
 0xfde   :  { %2500 = vtanh.f32 %v1159_v61 }
 0xfe7   :  { %v2499_v62 = vpop.eup %2498 }
 0xfe8   :  { %v1162_v63 = vadd.f32 1.0, %v2499_v62 }
 0xfea   :  { %v1164_v5 = vmul.f32 %v1162_v63, %v1148_v2 }
 0xfeb   :  { %v2501_v1 = vpop.eup %2500 }
 0xfec   :  { %v1163_v4 = vadd.f32 1.0, %v2501_v1 }
 0xfee   :  { %v1165_v6 = vmul.f32 %v1163_v4, %v1149_v3 }
 0xff0   :  { %v1166_v11 = vpack.c.bf16 %v1165_v6, %v1164_v5 }
 0xff2   :  { %2340 = vmatmul.mubr.msk.bf16.vlgmr.msra.gmra.mxu0 %vm279_vm3, %v1166_v11 }
 0xff3   :  { %2353 = vmatprep.mubr.msk.bf16.mxu0 %vm2572_vm1, %v2571_v15 }
0x10b2   :  { %v1218_v14 = vpop.f32.mrf.mxu0 }
0x10b3   :  { %v1219_v16 = vadd.f32 %v2126_v12, %v1218_v14 }
0x10b4   :  { %v2341_v21 = vpop.f32.mrf.mxu0 }
0x10b5   :  { %v1225_v22 = vsel %vm746_vm4, %v1219_v16, 0.0 }
0x10b6   :  { %1226 = vadd.xlane.f32.xlu0 %v1225_v22  ;;  %v1221_v23 = vpop.f32.mrf.mxu0 }
0x10b7   :  { %v1222_v24 = vadd.f32 %v2126_v12, %v1221_v23 }
0x10b8   :  { %v2342_v25 = vpop.f32.mrf.mxu0 }
0x10b9   :  { %v1228_v26 = vsel %vm746_vm4, %v1222_v24, 0.0 }
0x10ba   :  { %1229 = vadd.xlane.f32.xlu1 %v1228_v26 }
0x113f   :  { %v1227_v27 = vpop.xlane.xlu0 %1226 }
0x1140   :  { %v1231_v28 = vmul.f32 0.125, %v1227_v27 }
0x1142   :  { %v1233_v29 = vsub.f32 %v1219_v16, %v1231_v28 }
0x1143   :  { %v1230_v33 = vpop.xlane.xlu1 %1229 }
0x1144   :  { %v1232_v34 = vmul.f32 0.125, %v1230_v33  ;;  %v1235_v35 = vmul.f32 %v1233_v29, %v1233_v29 }
0x1146   :  { %v1234_v36 = vsub.f32 %v1222_v24, %v1232_v34  ;;  %v1237_v37 = vsel %vm746_vm4, %v1235_v35, 0.0 }
0x1147   :  { %1238 = vadd.xlane.f32.xlu0 %v1237_v37 }
0x1148   :  { %v1236_v38 = vmul.f32 %v1234_v36, %v1234_v36 }
0x114a   :  { %v1240_v39 = vsel %vm746_vm4, %v1236_v38, 0.0 }
0x114b   :  { %1241 = vadd.xlane.f32.xlu1 %v1240_v39 }
0x11d0   :  { %v1239_v40 = vpop.xlane.xlu0 %1238 }
0x11d1   :  { %v1243_v41 = vmul.f32 0.125, %v1239_v40 }
0x11d3   :  { %v1245_v42 = vadd.f32 1e-05, %v1243_v41 }
0x11d4   :  { %v1242_v43 = vpop.xlane.xlu1 %1241 }
0x11d5   :  { %2502 = vrsqrt.f32 %v1245_v42  ;;  %v1244_v44 = vmul.f32 0.125, %v1242_v43 }
0x11d7   :  { %v1246_v45 = vadd.f32 1e-05, %v1244_v44 }
0x11d9   :  { %2504 = vrsqrt.f32 %v1246_v45 }
0x11e2   :  { %v2503_v46 = vpop.eup %2502 }
0x11e3   :  { %v1249_v47 = vmul.f32 %v2503_v46, %v1233_v29 }
0x11e5   :  { %v1256_v53 = vmul.f32 %v2129_v48, %v1249_v47 }
0x11e6   :  { %v2505_v49 = vpop.eup %2504 }
0x11e7   :  { %v1250_v50 = vmul.f32 %v2505_v49, %v1234_v36  ;;  %v1263_v55 = vadd.f32 %v2130_v54, %v1256_v53 }
0x11e9   :  { %v1257_v0 = vmul.f32 %v2129_v48, %v1250_v50 }
0x11eb   :  { %v1264_v56 = vadd.f32 %v2130_v54, %v1257_v0  ;;  %v2134_v0 = vld [vmem:[%s3027_s1 + $0x100] sm:$0xf] }
0x11ed   :  { %v1265_v57 = vpack.c.bf16 %v1264_v56, %v1263_v55  ;;  %v1408_v55 = vsel %vm799_vm5, %v2134_v0, 0 }
0x11ef   :  { %2343 = vmatprep.subr.bf16.mxu1 %v1265_v57 }
0x11f0   :  { %2344 = vmatpush3.bf16.msra.mxu1 %v1265_v57 }
0x11f1   :  { %2357 = vmatprep.subr.bf16.mxu1 %v2571_v15 }
0x11f3   :  { %2346 = vmatmul.mubr.msk.bf16.vlgmr.msra.gmra.mxu1 %vm279_vm3, %v2696_v17 }
0x11f4   :  { %2359 = vmatprep.mubr.msk.bf16.mxu1 %vm2572_vm1, %v2571_v15  ;;  %2358 = vmatpush3.bf16.msra.mxu1 %v1408_v55 }
0x12b3   :  { %v2347_v58 = vpop.f32.mrf.mxu1 }
0x12b4   :  { %v1309_v59 = vadd.f32 %v2347_v58, %v2705_v19 }
0x12b5   :  { %v1300_v60 = vpop.f32.mrf.mxu1 }
0x12b6   :  { %v1321_v61 = vmul.f32 0.044715, %v1309_v59  ;;  %v1301_v62 = vadd.f32 %v1300_v60, %v2707_v20  ;;  %v1317_v39 = vmul.f32 0.5, %v1309_v59 }
0x12b7   :  { %v2348_v63 = vpop.f32.mrf.mxu1 }
0x12b8   :  { %v1325_v1 = vmul.f32 %v1321_v61, %v1309_v59  ;;  %v1319_v2 = vmul.f32 0.044715, %v1301_v62  ;;  %v1312_v3 = vadd.f32 %v2348_v63, %v2703_v18  ;;  %v1315_v49 = vmul.f32 0.5, %v1301_v62 }
0x12b9   :  { %v1303_v4 = vpop.f32.mrf.mxu1 }
0x12ba   :  { %v1329_v5 = vmul.f32 %v1325_v1, %v1309_v59  ;;  %v1323_v6 = vmul.f32 %v1319_v2, %v1301_v62  ;;  %v1322_v11 = vmul.f32 0.044715, %v1312_v3  ;;  %v1304_v17 = vadd.f32 %v1303_v4, %v2712_v30  ;;  %v2907_v1 = vld [vmem:[%s3027_s1 + $0x180] sm:$0xff]   ;;  %v2439_v2 = vld [vmem:[%s3027_s1 + $0x128] sm:$0xff]  }
0x12bb   :  { %v1318_v40 = vmul.f32 0.5, %v1312_v3 }
0x12bc   :  { %v1333_v12 = vadd.f32 %v1329_v5, %v1309_v59  ;;  %v1327_v14 = vmul.f32 %v1323_v6, %v1301_v62  ;;  %v1326_v16 = vmul.f32 %v1322_v11, %v1312_v3  ;;  %v1320_v21 = vmul.f32 0.044715, %v1304_v17 }
0x12bd   :  { %v1316_v43 = vmul.f32 0.5, %v1304_v17 }
0x12be   :  { %v1337_v22 = vmul.f32 0.7978846, %v1333_v12  ;;  %v1331_v23 = vadd.f32 %v1327_v14, %v1301_v62  ;;  %v1330_v24 = vmul.f32 %v1326_v16, %v1312_v3  ;;  %v1324_v25 = vmul.f32 %v1320_v21, %v1304_v17 }
0x12c0   :  { %2506 = vtanh.f32 %v1337_v22  ;;  %v1335_v26 = vmul.f32 0.7978846, %v1331_v23  ;;  %v1334_v27 = vadd.f32 %v1330_v24, %v1312_v3  ;;  %v1328_v28 = vmul.f32 %v1324_v25, %v1304_v17 }
0x12c2   :  { %v1338_v29 = vmul.f32 0.7978846, %v1334_v27  ;;  %v1332_v33 = vadd.f32 %v1328_v28, %v1304_v17  ;;  %2508 = vtanh.f32 %v1335_v26 }
0x12c4   :  { %2510 = vtanh.f32 %v1338_v29  ;;  %v1336_v34 = vmul.f32 0.7978846, %v1332_v33 }
0x12c6   :  { %2512 = vtanh.f32 %v1336_v34 }
0x12cd   :  { %v2507_v35 = vpop.eup %2506 }
0x12ce   :  { %v1345_v37 = vadd.f32 1.0, %v2507_v35 }
0x12cf   :  { %v2509_v36 = vpop.eup %2508 }
0x12d0   :  { %v1349_v44 = vmul.f32 %v1345_v37, %v1317_v39  ;;  %v1343_v46 = vadd.f32 1.0, %v2509_v36 }
0x12d1   :  { %v2511_v38 = vpop.eup %2510 }
0x12d2   :  { %v1346_v41 = vadd.f32 1.0, %v2511_v38  ;;  %v1347_v53 = vmul.f32 %v1343_v46, %v1315_v49 }
0x12d3   :  { %v2513_v42 = vpop.eup %2512 }
0x12d4   :  { %v1350_v45 = vmul.f32 %v1346_v41, %v1318_v40  ;;  %v1344_v47 = vadd.f32 1.0, %v2513_v42  ;;  %v2141_v40 = vld [vmem:[%s3028_s2 + $0x9] ss:$0 sm:$0xff] }
0x12d6   :  { %v1352_v48 = vpack.c.bf16 %v1350_v45, %v1349_v44  ;;  %v1348_v50 = vmul.f32 %v1344_v47, %v1316_v43 }
0x12d8   :  { %2350 = vmatpush3.bf16.msra.mxu0 %v1352_v48  ;;  %v1351_v54 = vpack.c.bf16 %v1348_v50, %v1347_v53 }
0x12d9   :  { %2351 = vmatprep.subr.bf16.mxu0 %v2571_v15 }
0x12dc   :  { %2352 = vmatpush3.bf16.msra.mxu0 %v1351_v54 }
0x12dd   :  { %2363 = vmatprep.subr.bf16.mxu0 %v2571_v15 }
0x12df   :  { %2354 = vmatmul.mubr.msk.bf16.vlgmr.msra.gmra.mxu0 %vm38_vm0, %v2719_v7 }
0x12e0   :  { %2367 = vmatprep.mubr.msk.bf16.mxu0 %vm2572_vm1, %v2571_v15  ;;  %2364 = vmatpush3.bf16.msra.mxu0 %v2439_v2 }
0x12e1   :  { %2365 = vmatprep.subr.bf16.mxu0 %v2571_v15 }
0x139f   :  { %v1387_v56 = vpop.f32.mrf.mxu0 }
0x13a0   :  { %v1388_v58 = vadd.f32 %v1387_v56, %v2726_v8 }
0x13a1   :  { %v2355_v57 = vpop.f32.mrf.mxu0 }
0x13a2   :  { %v1394_v7 = vadd.f32 %v1388_v58, %v2802_v9  ;;  %v2440_v9 = vld [vmem:[%s3027_s1 + $0x120] sm:$0xff]  }
0x13a3   :  { %v1390_v59 = vpop.f32.mrf.mxu0  ;;  %2366 = vmatpush3.bf16.msra.mxu0 %v2440_v9 }
0x13a4   :  { %v1391_v60 = vadd.f32 %v1390_v59, %v2730_v13  ;;  %2377 = vmatprep.subr.bf16.mxu0 %v2571_v15 }
0x13a5   :  { %v2356_v61 = vpop.f32.mrf.mxu0 }
0x13a6   :  { %v1395_v62 = vadd.f32 %v1391_v60, %v2804_v10  ;;  %v2135_v10 = vld [vmem:[%s3028_s2 + $0x8] ss:$0 sm:$0xff] }
0x13a8   :  { %v1396_v63 = vpack.c.bf16 %v1395_v62, %v1394_v7 }
0x13aa   :  { %2360 = vmatmul.mubr.msk.bf16.vlgmr.msra.gmra.mxu1 %vm746_vm4, %v1396_v63 }
0x13ab   :  { %2373 = vmatprep.mubr.msk.bf16.mxu1 %vm279_vm3, %v2907_v1 }
0x146a   :  { %v1444_v3 = vpop.f32.mrf.mxu1 }
0x146b   :  { %v1445_v4 = vadd.f32 %v2135_v10, %v1444_v3  ;;  %v2145_v3 = vld [vmem:[%s3028_s2 + $0x16] ss:$0 sm:$0xff] }
0x146c   :  { %v2361_v5 = vpop.f32.mrf.mxu1 }
0x146d   :  { %v1453_v6 = vmul.f32 0.044715, %v1445_v4  ;;  %v1451_v34 = vmul.f32 0.5, %v1445_v4 }
0x146e   :  { %v1447_v11 = vpop.f32.mrf.mxu1 }
0x146f   :  { %v1455_v17 = vmul.f32 %v1453_v6, %v1445_v4  ;;  %v1448_v12 = vadd.f32 %v2135_v10, %v1447_v11  ;;  %v2146_v11 = vld [vmem:[%s3028_s2 + $0x17] ss:$0 sm:$0xff] }
0x1470   :  { %v2362_v14 = vpop.f32.mrf.mxu1 }
0x1471   :  { %v1457_v16 = vmul.f32 %v1455_v17, %v1445_v4  ;;  %v1454_v21 = vmul.f32 0.044715, %v1448_v12  ;;  %v1452_v35 = vmul.f32 0.5, %v1448_v12 }
0x1473   :  { %v1459_v22 = vadd.f32 %v1457_v16, %v1445_v4  ;;  %v1456_v23 = vmul.f32 %v1454_v21, %v1448_v12  ;;  %v2942_v21 = vld [vmem:[%s3027_s1 + $0x188] sm:$0xff]  }
0x1475   :  { %v1461_v24 = vmul.f32 0.7978846, %v1459_v22  ;;  %v1458_v25 = vmul.f32 %v1456_v23, %v1448_v12 }
0x1477   :  { %2514 = vtanh.f32 %v1461_v24  ;;  %v1460_v26 = vadd.f32 %v1458_v25, %v1448_v12 }
0x1479   :  { %v1462_v27 = vmul.f32 0.7978846, %v1460_v26 }
0x147b   :  { %2516 = vtanh.f32 %v1462_v27 }
0x1484   :  { %v2515_v28 = vpop.eup %2514 }
0x1485   :  { %v1465_v29 = vadd.f32 1.0, %v2515_v28 }
0x1487   :  { %v1467_v37 = vmul.f32 %v1465_v29, %v1451_v34 }
0x1488   :  { %v2517_v33 = vpop.eup %2516 }
0x1489   :  { %v1466_v36 = vadd.f32 1.0, %v2517_v33 }
0x148b   :  { %v1468_v38 = vmul.f32 %v1466_v36, %v1452_v35 }
0x148d   :  { %v1469_v39 = vpack.c.bf16 %v1468_v38, %v1467_v37 }
0x148f   :  { %2368 = vmatmul.mubr.msk.bf16.vlgmr.msra.gmra.mxu0 %vm38_vm0, %v1469_v39 }
0x1490   :  { %2381 = vmatprep.mubr.msk.bf16.mxu0 %vm2572_vm1, %v2571_v15 }
0x154f   :  { %v1529_v41 = vpop.f32.mrf.mxu0 }
0x1550   :  { %v1530_v42 = vadd.f32 %v2141_v40, %v1529_v41 }
0x1551   :  { %v2369_v43 = vpop.f32.mrf.mxu0 }
0x1552   :  { %v1536_v44 = vsel %vm279_vm3, %v1530_v42, 0.0 }
0x1553   :  { %1537 = vadd.xlane.f32.xlu0 %v1536_v44  ;;  %v1532_v45 = vpop.f32.mrf.mxu0 }
0x1554   :  { %v1533_v46 = vadd.f32 %v2141_v40, %v1532_v45 }
0x1555   :  { %v2370_v47 = vpop.f32.mrf.mxu0 }
0x1556   :  { %v1539_v48 = vsel %vm279_vm3, %v1533_v46, 0.0 }
0x1557   :  { %1540 = vadd.xlane.f32.xlu1 %v1539_v48 }
0x15dc   :  { %v1538_v49 = vpop.xlane.xlu0 %1537 }
0x15dd   :  { %v1542_v50 = vmul.f32 0.0625, %v1538_v49 }
0x15df   :  { %v1544_v53 = vsub.f32 %v1530_v42, %v1542_v50 }
0x15e0   :  { %v1541_v54 = vpop.xlane.xlu1 %1540 }
0x15e1   :  { %v1543_v0 = vmul.f32 0.0625, %v1541_v54  ;;  %v1546_v55 = vmul.f32 %v1544_v53, %v1544_v53 }
0x15e3   :  { %v1545_v56 = vsub.f32 %v1533_v46, %v1543_v0  ;;  %v1548_v57 = vsel %vm279_vm3, %v1546_v55, 0.0 }
0x15e4   :  { %1549 = vadd.xlane.f32.xlu0 %v1548_v57 }
0x15e5   :  { %v1547_v58 = vmul.f32 %v1545_v56, %v1545_v56 }
0x15e7   :  { %v1551_v59 = vsel %vm279_vm3, %v1547_v58, 0.0 }
0x15e8   :  { %1552 = vadd.xlane.f32.xlu1 %v1551_v59 }
0x166d   :  { %v1550_v60 = vpop.xlane.xlu0 %1549 }
0x166e   :  { %v1554_v61 = vmul.f32 0.0625, %v1550_v60 }
0x1670   :  { %v1556_v7 = vadd.f32 1e-05, %v1554_v61 }
0x1671   :  { %v1553_v62 = vpop.xlane.xlu1 %1552 }
0x1672   :  { %2518 = vrsqrt.f32 %v1556_v7  ;;  %v1555_v63 = vmul.f32 0.0625, %v1553_v62 }
0x1674   :  { %v1557_v2 = vadd.f32 1e-05, %v1555_v63 }
0x1676   :  { %2520 = vrsqrt.f32 %v1557_v2 }
0x167f   :  { %v2519_v9 = vpop.eup %2518 }
0x1680   :  { %v1560_v10 = vmul.f32 %v2519_v9, %v1544_v53 }
0x1682   :  { %v1567_v6 = vmul.f32 %v2145_v3, %v1560_v10 }
0x1683   :  { %v2521_v4 = vpop.eup %2520 }
0x1684   :  { %v1561_v5 = vmul.f32 %v2521_v4, %v1545_v56  ;;  %v1574_v12 = vadd.f32 %v2146_v11, %v1567_v6 }
0x1686   :  { %v1568_v17 = vmul.f32 %v2145_v3, %v1561_v5 }
0x1688   :  { %v1575_v14 = vadd.f32 %v2146_v11, %v1568_v17  ;;  %v2957_v11 = vld [vmem:[%s3027_s1 + $0x1a0] sm:$0xff]  }
0x1689   :  { %v2441_v17 = vld [vmem:[%s3027_s1 + $0x140] sm:$0xff]  }
0x168a   :  { %v1576_v16 = vpack.c.bf16 %v1575_v14, %v1574_v12 }
0x168c   :  { %2371 = vmatprep.subr.bf16.mxu1 %v1576_v16 }
0x168d   :  { %2372 = vmatpush3.bf16.msra.mxu1 %v1576_v16 }
0x168e   :  { %2385 = vmatprep.subr.bf16.mxu1 %v2571_v15 }
0x1690   :  { %2374 = vmatmul.mubr.msk.bf16.vlgmr.msra.gmra.mxu1 %vm279_vm3, %v2942_v21 }
0x1691   :  { %2387 = vmatprep.mubr.msk.bf16.mxu1 %vm2572_vm1, %v2571_v15  ;;  %2386 = vmatpush3.bf16.msra.mxu1 %v2441_v17 }
0x1750   :  { %v2375_v22 = vpop.f32.mrf.mxu1 }
0x1751   :  { %v1620_v23 = vadd.f32 %v2375_v22, %v2705_v19 }
0x1752   :  { %v1611_v24 = vpop.f32.mrf.mxu1 }
0x1753   :  { %v1632_v25 = vmul.f32 0.044715, %v1620_v23  ;;  %v1612_v26 = vadd.f32 %v1611_v24, %v2707_v20  ;;  %v1628_v58 = vmul.f32 0.5, %v1620_v23 }
0x1754   :  { %v2376_v27 = vpop.f32.mrf.mxu1 }
0x1755   :  { %v1636_v28 = vmul.f32 %v1632_v25, %v1620_v23  ;;  %v1630_v29 = vmul.f32 0.044715, %v1612_v26  ;;  %v1623_v33 = vadd.f32 %v2376_v27, %v2703_v18  ;;  %v1626_v3 = vmul.f32 0.5, %v1612_v26 }
0x1756   :  { %v1614_v34 = vpop.f32.mrf.mxu1 }
0x1757   :  { %v1640_v35 = vmul.f32 %v1636_v28, %v1620_v23  ;;  %v1634_v36 = vmul.f32 %v1630_v29, %v1612_v26  ;;  %v1633_v37 = vmul.f32 0.044715, %v1623_v33  ;;  %v1615_v38 = vadd.f32 %v1614_v34, %v2712_v30  ;;  %v2442_v28 = vld [vmem:[%s3027_s1 + $0x178] sm:$0xff]   ;;  %v2443_v29 = vld [vmem:[%s3027_s1 + $0x170] sm:$0xff]  }
0x1758   :  { %v1629_v59 = vmul.f32 0.5, %v1623_v33 }
0x1759   :  { %v1644_v39 = vadd.f32 %v1640_v35, %v1620_v23  ;;  %v1638_v40 = vmul.f32 %v1634_v36, %v1612_v26  ;;  %v1637_v41 = vmul.f32 %v1633_v37, %v1623_v33  ;;  %v1631_v42 = vmul.f32 0.044715, %v1615_v38 }
0x175a   :  { %v1627_v7 = vmul.f32 0.5, %v1615_v38 }
0x175b   :  { %v1648_v43 = vmul.f32 0.7978846, %v1644_v39  ;;  %v1642_v44 = vadd.f32 %v1638_v40, %v1612_v26  ;;  %v1641_v45 = vmul.f32 %v1637_v41, %v1623_v33  ;;  %v1635_v46 = vmul.f32 %v1631_v42, %v1615_v38 }
0x175d   :  { %2522 = vtanh.f32 %v1648_v43  ;;  %v1646_v47 = vmul.f32 0.7978846, %v1642_v44  ;;  %v1645_v48 = vadd.f32 %v1641_v45, %v1623_v33  ;;  %v1639_v49 = vmul.f32 %v1635_v46, %v1615_v38 }
0x175f   :  { %v1649_v50 = vmul.f32 0.7978846, %v1645_v48  ;;  %v1643_v53 = vadd.f32 %v1639_v49, %v1615_v38  ;;  %2524 = vtanh.f32 %v1646_v47 }
0x1761   :  { %2526 = vtanh.f32 %v1649_v50  ;;  %v1647_v54 = vmul.f32 0.7978846, %v1643_v53 }
0x1763   :  { %2528 = vtanh.f32 %v1647_v54 }
0x176a   :  { %v2523_v0 = vpop.eup %2522 }
0x176b   :  { %v1656_v56 = vadd.f32 1.0, %v2523_v0 }
0x176c   :  { %v2525_v55 = vpop.eup %2524 }
0x176d   :  { %v1660_v62 = vmul.f32 %v1656_v56, %v1628_v58  ;;  %v1654_v2 = vadd.f32 1.0, %v2525_v55 }
0x176e   :  { %v2527_v57 = vpop.eup %2526 }
0x176f   :  { %v1657_v60 = vadd.f32 1.0, %v2527_v57  ;;  %v1658_v5 = vmul.f32 %v1654_v2, %v1626_v3 }
0x1770   :  { %v2529_v61 = vpop.eup %2528 }
0x1771   :  { %v1661_v63 = vmul.f32 %v1657_v60, %v1629_v59  ;;  %v1655_v9 = vadd.f32 1.0, %v2529_v61  ;;  %v2163_v59 = vld [vmem:[%s3028_s2 + $0xb] ss:$0 sm:$0xff] }
0x1773   :  { %v1663_v10 = vpack.c.bf16 %v1661_v63, %v1660_v62  ;;  %v1659_v4 = vmul.f32 %v1655_v9, %v1627_v7 }
0x1775   :  { %2378 = vmatpush3.bf16.msra.mxu0 %v1663_v10  ;;  %v1662_v6 = vpack.c.bf16 %v1659_v4, %v1658_v5 }
0x1776   :  { %2379 = vmatprep.subr.bf16.mxu0 %v2571_v15 }
0x1779   :  { %2380 = vmatpush3.bf16.msra.mxu0 %v1662_v6 }
0x177a   :  { %2391 = vmatprep.subr.bf16.mxu0 %v2571_v15 }
0x177c   :  { %2382 = vmatmul.mubr.msk.bf16.vlgmr.msra.gmra.mxu0 %vm38_vm0, %v2957_v11 }
0x177d   :  { %2399 = vmatprep.mubr.msk.bf16.mxu0 %vm2572_vm1, %v2571_v15  ;;  %2392 = vmatpush3.bf16.msra.mxu0 %v2442_v28 }
0x177e   :  { %2393 = vmatprep.subr.bf16.mxu0 %v2571_v15 }
0x1781   :  { %2394 = vmatpush3.bf16.msra.mxu0 %v2443_v29 }
0x1782   :  { %2395 = vmatprep.subr.bf16.mxu0 %v2571_v15 }
0x183c   :  { %v1698_v12 = vpop.f32.mrf.mxu0 }
0x183d   :  { %v1699_v16 = vadd.f32 %v1698_v12, %v2726_v8 }
0x183e   :  { %v2383_v14 = vpop.f32.mrf.mxu0 }
0x183f   :  { %v1705_v25 = vadd.f32 %v1699_v16, %v2745_v51  ;;  %v2444_v51 = vld [vmem:[%s3027_s1 + $0x168] sm:$0xff]  }
0x1840   :  { %v1701_v22 = vpop.f32.mrf.mxu0  ;;  %2396 = vmatpush3.bf16.msra.mxu0 %v2444_v51 }
0x1841   :  { %v1702_v23 = vadd.f32 %v1701_v22, %v2730_v13  ;;  %2397 = vmatprep.subr.bf16.mxu0 %v2571_v15 }
0x1842   :  { %v2384_v24 = vpop.f32.mrf.mxu0 }
0x1843   :  { %v1706_v26 = vadd.f32 %v1702_v23, %v2747_v52  ;;  %v2445_v52 = vld [vmem:[%s3027_s1 + $0x160] sm:$0xff]  }
0x1844   :  { %2398 = vmatpush3.bf16.msra.mxu0 %v2445_v52 }
0x1845   :  { %v1707_v27 = vpack.c.bf16 %v1706_v26, %v1705_v25 }
0x1847   :  { %2388 = vmatmul.mubr.msk.bf16.vlgmr.msra.gmra.mxu1 %vm279_vm3, %v1707_v27 }
0x1848   :  { %2405 = vmatprep.mubr.msk.bf16.mxu1 %vm279_vm3, %v2907_v1  ;;  %v2152_v1 = vld [vmem:[%s3028_s2 + $0xa] ss:$0 sm:$0xff] }
0x1907   :  { %v1759_v33 = vpop.f32.mrf.mxu1 }
0x1908   :  { %v1760_v34 = vadd.f32 %v2152_v1, %v1759_v33 }
0x1909   :  { %v2389_v35 = vpop.f32.mrf.mxu1 }
0x190a   :  { %v1768_v36 = vmul.f32 0.044715, %v1760_v34  ;;  %v1766_v54 = vmul.f32 0.5, %v1760_v34 }
0x190b   :  { %v1762_v37 = vpop.f32.mrf.mxu1 }
0x190c   :  { %v1770_v38 = vmul.f32 %v1768_v36, %v1760_v34  ;;  %v1763_v39 = vadd.f32 %v2152_v1, %v1762_v37  ;;  %v2169_v1 = vld [vmem:[%s3028_s2 + $0x18] ss:$0 sm:$0xff]  ;;  %v2170_v36 = vld [vmem:[%s3028_s2 + $0x19] ss:$0 sm:$0xff]  ;;  %s2574_s2 = smov [#allocation2]  }
0x190d   :  { %v2390_v40 = vpop.f32.mrf.mxu1  ;;  %s2045_s28 = sshll.u32 %s2574_s2, 4  ;;  %s2046_s28 = int_to_ptr.vmem [resolvable:$true] %s2045_s28 }
0x190e   :  { %v1772_v41 = vmul.f32 %v1770_v38, %v1760_v34  ;;  %v1769_v42 = vmul.f32 0.044715, %v1763_v39  ;;  %v1767_v0 = vmul.f32 0.5, %v1763_v39  ;;  %s2549_s3 = scalar_lea.vmem %s2046_s28, 256  ;;  %p2554_p1 = scmp.lt.s32.totalorder %s2046_s28, %s2046_s28 }
0x190f   :  { %p2550_p0 = scmp.ne.s32.totalorder %s2046_s28, %s2549_s3  ;;  %p2555_p2 = scmp.lt.s32.totalorder %s2549_s3, %s2549_s3 }
0x1910   :  { %v1774_v43 = vadd.f32 %v1772_v41, %v1760_v34  ;;  %v1771_v44 = vmul.f32 %v1769_v42, %v1763_v39 }
0x1911   :  { %p2556_p3 = por %p2555_p2, %p2554_p1 }
0x1912   :  { %v1776_v45 = vmul.f32 0.7978846, %v1774_v43  ;;  %v1773_v46 = vmul.f32 %v1771_v44, %v1763_v39 }
0x1913   :  { %p2557_p4 = pnand %p2556_p3, %p2550_p0 }
0x1914   :  { %2530 = vtanh.f32 %v1776_v45  ;;  %v1775_v47 = vadd.f32 %v1773_v46, %v1763_v39 }
0x1916   :  { %v1777_v48 = vmul.f32 0.7978846, %v1775_v47 }
0x1918   :  { %2532 = vtanh.f32 %v1777_v48 }
0x1921   :  { %v2531_v49 = vpop.eup %2530 }
0x1922   :  { %v1780_v50 = vadd.f32 1.0, %v2531_v49 }
0x1924   :  { %v1782_v56 = vmul.f32 %v1780_v50, %v1766_v54 }
0x1925   :  { %v2533_v53 = vpop.eup %2532 }
0x1926   :  { %v1781_v55 = vadd.f32 1.0, %v2533_v53 }
0x1928   :  { %v1783_v57 = vmul.f32 %v1781_v55, %v1767_v0 }
0x192a   :  { %v1784_v58 = vpack.c.bf16 %v1783_v57, %v1782_v56 }
0x192c   :  { %2400 = vmatmul.mubr.msk.bf16.vlgmr.msra.gmra.mxu0 %vm203_vm2, %v1784_v58 }
0x19ec   :  { %v1860_v60 = vpop.f32.mrf.mxu0 }
0x19ed   :  { %v1861_v61 = vadd.f32 %v2163_v59, %v1860_v60 }
0x19ee   :  { %v2401_v7 = vpop.f32.mrf.mxu0 }
0x19ef   :  { %v1867_v62 = vsel %vm38_vm0, %v1861_v61, 0.0 }
0x19f0   :  { %1868 = vadd.xlane.f32.xlu0 %v1867_v62  ;;  %v1863_v63 = vpop.f32.mrf.mxu0 }
0x19f1   :  { %v1864_v2 = vadd.f32 %v2163_v59, %v1863_v63 }
0x19f2   :  { %v2402_v9 = vpop.f32.mrf.mxu0 }
0x19f3   :  { %v1870_v10 = vsel %vm38_vm0, %v1864_v2, 0.0 }
0x19f4   :  { %1871 = vadd.xlane.f32.xlu1 %v1870_v10 }
0x1a79   :  { %v1869_v3 = vpop.xlane.xlu0 %1868 }
0x1a7a   :  { %v1873_v4 = vmul.f32 0.03125, %v1869_v3 }
0x1a7c   :  { %v1875_v5 = vsub.f32 %v1861_v61, %v1873_v4 }
0x1a7d   :  { %v1872_v6 = vpop.xlane.xlu1 %1871 }
0x1a7e   :  { %v1874_v17 = vmul.f32 0.03125, %v1872_v6  ;;  %v1877_v12 = vmul.f32 %v1875_v5, %v1875_v5 }
0x1a80   :  { %v1876_v14 = vsub.f32 %v1864_v2, %v1874_v17  ;;  %v1879_v16 = vsel %vm38_vm0, %v1877_v12, 0.0 }
0x1a81   :  { %1880 = vadd.xlane.f32.xlu0 %v1879_v16 }
0x1a82   :  { %v1878_v22 = vmul.f32 %v1876_v14, %v1876_v14 }
0x1a84   :  { %v1882_v23 = vsel %vm38_vm0, %v1878_v22, 0.0 }
0x1a85   :  { %1883 = vadd.xlane.f32.xlu1 %v1882_v23 }
0x1b0a   :  { %v1881_v24 = vpop.xlane.xlu0 %1880 }
0x1b0b   :  { %v1885_v25 = vmul.f32 0.03125, %v1881_v24 }
0x1b0d   :  { %v1887_v26 = vadd.f32 1e-05, %v1885_v25 }
0x1b0e   :  { %v1884_v27 = vpop.xlane.xlu1 %1883 }
0x1b0f   :  { %2534 = vrsqrt.f32 %v1887_v26  ;;  %v1886_v28 = vmul.f32 0.03125, %v1884_v27 }
0x1b11   :  { %v1888_v29 = vadd.f32 1e-05, %v1886_v28 }
0x1b13   :  { %2536 = vrsqrt.f32 %v1888_v29 }
0x1b1c   :  { %v2535_v51 = vpop.eup %2534 }
0x1b1d   :  { %v1891_v52 = vmul.f32 %v2535_v51, %v1875_v5 }
0x1b1f   :  { %v1898_v35 = vmul.f32 %v2169_v1, %v1891_v52 }
0x1b20   :  { %v2537_v33 = vpop.eup %2536 }
0x1b21   :  { %v1892_v34 = vmul.f32 %v2537_v33, %v1876_v14  ;;  %v1905_v38 = vadd.f32 %v2170_v36, %v1898_v35 }
0x1b23   :  { %v1899_v37 = vmul.f32 %v2169_v1, %v1892_v34 }
0x1b25   :  { %v1906_v39 = vadd.f32 %v2170_v36, %v1899_v37 }
0x1b27   :  { %v1907_v40 = vpack.c.bf16 %v1906_v39, %v1905_v38 }
0x1b29   :  { %2403 = vmatprep.subr.bf16.mxu1 %v1907_v40 }
0x1b2a   :  { %2404 = vmatpush3.bf16.msra.mxu1 %v1907_v40 }
0x1b2b   :  { %2409 = vmatprep.subr.bf16.mxu1 %v2571_v15 }
0x1b2d   :  { %2406 = vmatmul.mubr.msk.bf16.vlgmr.msra.gmra.mxu1 %vm279_vm3, %v2942_v21 }
0x1b2e   :  { %2413 = vmatprep.mubr.msk.bf16.mxu1 %vm2572_vm1, %v2571_v15 }
0x1bed   :  { %v2407_v41 = vpop.f32.mrf.mxu1 }
0x1bee   :  { %v1951_v42 = vadd.f32 %v2407_v41, %v2705_v19 }
0x1bef   :  { %v1942_v43 = vpop.f32.mrf.mxu1 }
0x1bf0   :  { %v1963_v44 = vmul.f32 0.044715, %v1951_v42  ;;  %v1943_v45 = vadd.f32 %v1942_v43, %v2707_v20  ;;  %v1959_v4 = vmul.f32 0.5, %v1951_v42 }
0x1bf1   :  { %v2408_v46 = vpop.f32.mrf.mxu1 }
0x1bf2   :  { %v1967_v47 = vmul.f32 %v1963_v44, %v1951_v42  ;;  %v1961_v48 = vmul.f32 0.044715, %v1943_v45  ;;  %v1954_v49 = vadd.f32 %v2408_v46, %v2703_v18  ;;  %v1957_v25 = vmul.f32 0.5, %v1943_v45 }
0x1bf3   :  { %v1945_v50 = vpop.f32.mrf.mxu1 }
0x1bf4   :  { %v1971_v53 = vmul.f32 %v1967_v47, %v1951_v42  ;;  %v1965_v54 = vmul.f32 %v1961_v48, %v1943_v45  ;;  %v1964_v0 = vmul.f32 0.044715, %v1954_v49  ;;  %v1946_v21 = vadd.f32 %v1945_v50, %v2712_v30 }
0x1bf5   :  { %v1960_v5 = vmul.f32 0.5, %v1954_v49 }
0x1bf6   :  { %v1975_v55 = vadd.f32 %v1971_v53, %v1951_v42  ;;  %v1969_v56 = vmul.f32 %v1965_v54, %v1943_v45  ;;  %v1968_v57 = vmul.f32 %v1964_v0, %v1954_v49  ;;  %v1962_v58 = vmul.f32 0.044715, %v1946_v21 }
0x1bf7   :  { %v1958_v12 = vmul.f32 0.5, %v1946_v21 }
0x1bf8   :  { %v1979_v19 = vmul.f32 0.7978846, %v1975_v55  ;;  %v1973_v59 = vadd.f32 %v1969_v56, %v1943_v45  ;;  %v1972_v60 = vmul.f32 %v1968_v57, %v1954_v49  ;;  %v1966_v61 = vmul.f32 %v1962_v58, %v1946_v21 }
0x1bfa   :  { %2538 = vtanh.f32 %v1979_v19  ;;  %v1977_v20 = vmul.f32 0.7978846, %v1973_v59  ;;  %v1976_v7 = vadd.f32 %v1972_v60, %v1954_v49  ;;  %v1970_v62 = vmul.f32 %v1966_v61, %v1946_v21 }
0x1bfc   :  { %v1980_v63 = vmul.f32 0.7978846, %v1976_v7  ;;  %v1974_v18 = vadd.f32 %v1970_v62, %v1946_v21  ;;  %2540 = vtanh.f32 %v1977_v20 }
0x1bfe   :  { %2542 = vtanh.f32 %v1980_v63  ;;  %v1978_v2 = vmul.f32 0.7978846, %v1974_v18 }
0x1c00   :  { %2544 = vtanh.f32 %v1978_v2 }
0x1c07   :  { %v2539_v9 = vpop.eup %2538 }
0x1c08   :  { %v1987_v10 = vadd.f32 1.0, %v2539_v9 }
0x1c09   :  { %v2541_v30 = vpop.eup %2540 }
0x1c0a   :  { %v1991_v14 = vmul.f32 %v1987_v10, %v1959_v4  ;;  %v1985_v22 = vadd.f32 1.0, %v2541_v30 }
0x1c0b   :  { %v2543_v3 = vpop.eup %2542 }
0x1c0c   :  { %v1988_v6 = vadd.f32 1.0, %v2543_v3  ;;  %v1989_v27 = vmul.f32 %v1985_v22, %v1957_v25 }
0x1c0d   :  { %v2545_v17 = vpop.eup %2544 }
0x1c0e   :  { %v1992_v16 = vmul.f32 %v1988_v6, %v1960_v5  ;;  %v1986_v23 = vadd.f32 1.0, %v2545_v17 }
0x1c10   :  { %v1994_v24 = vpack.c.bf16 %v1992_v16, %v1991_v14  ;;  %v1990_v26 = vmul.f32 %v1986_v23, %v1958_v12 }
0x1c12   :  { %2410 = vmatpush3.bf16.msra.mxu1 %v1994_v24  ;;  %v1993_v28 = vpack.c.bf16 %v1990_v26, %v1989_v27 }
0x1c13   :  { %2411 = vmatprep.subr.bf16.mxu1 %v2571_v15 }
0x1c16   :  { %2412 = vmatpush3.bf16.msra.mxu1 %v1993_v28 }
0x1c19   :  { %2414 = vmatmul.mubr.msk.bf16.vlgmr.msra.gmra.mxu1 %vm38_vm0, %v2957_v11 }
0x1cd9   :  { %v2029_v29 = vpop.f32.mrf.mxu1 }
0x1cda   :  { %v2030_v51 = vadd.f32 %v2029_v29, %v2726_v8 }
0x1cdb   :  { %v2415_v52 = vpop.f32.mrf.mxu1 }
0x1cdc   :  { %v2036_v1 = vadd.f32 %v2030_v51, %v2636_v31 }
0x1cdd   :  { %v2032_v33 = vpop.f32.mrf.mxu1 }
0x1cde   :  { %2038 = vst.msk [vmem:[#allocation2] sm:$0xff] %vm38_vm0, %v2036_v1  ;;  %v2033_v34 = vadd.f32 %v2032_v33, %v2730_v13 }
0x1cdf   :  { %v2416_v35 = vpop.f32.mrf.mxu1 }
0x1ce0   :  { %v2037_v15 = vadd.f32 %v2033_v34, %v2638_v32 }
0x1ce2   :  { %2039 = vst.msk [vmem:[#allocation2 + $0x8] sm:$0xff] %vm38_vm0, %v2037_v15 }
0x1ce3   :  { %2560 = shalt.err (!%p2557_p4)
}
0x1ce4   :  { %s2575_s29 = smov 128   ;;  %s2576_s4 = smov 8  }
0x1ce5   :  { %2051 = dma.vmem_to_hbm [thread:$0]  %s2046_s28, 256, %s3031_s5, [#allocation3], %s2575_s29, %s2575_s29, %s2576_s4  }
0x1ce6   :  { %2569 = dma.done.wait [#allocation3], 256  }
0x1ce7   :  { %2570 = vsyncadd [#allocation3], 4294967040 }
0x1ce8   :  { %2055 = vsyncpa [#allocation3], 1 }

</bundles_post_ra>
